<compile_context>
chip_gen: v7x
topology: tpu7x:2x2x1
jax: 0.10.0
libtpu: 0.0.40
codegen_flags: <defaults>
</compile_context>

<pallas_src>
import functools

import jax
import jax.numpy as jnp
from jax import lax
from jax.experimental import pallas as pl
from jax.experimental.pallas import tpu as pltpu


def lstm_recurrence_kernel(x_ref, wih_ref, whh_ref, b_ref, hlast_ref, xw_scr,
                           *, seq_len, batch, hidden_dim, matmul_dtype, unroll):
    """x_ref: (T*B, E) time-major rows (already matmul_dtype); weights resident
    in VMEM (already matmul_dtype); bias b_ref is (1, 4H) float32.

    Writes the last hidden state (B, H) float32 to hlast_ref.
    """
    H = hidden_dim
    B = batch

    # ---- Input projection for ALL timesteps at once (hoisted off the serial
    # path): (T*B, E) @ (E, 4H) + bias -> (T*B, 4H) f32 pre-activations.
    # Bias is folded in once here instead of T broadcast+adds inside the loop.
    xw_scr[...] = (
        jnp.dot(x_ref[...], wih_ref[...], preferred_element_type=jnp.float32)
        + b_ref[...]
    )

    # Recurrent weights loaded once, outside the loop (already matmul_dtype).
    # TODO(synk): for a further win, stage whh in the MXU weight registers with
    # pltpu.matmul_push_rhs / matmul_acc_lhs / matmul_pop (requires manual
    # 256x256 (v6e/v7x) / 128x128 (v5e) tiling of the (H, 4H) tile).
    whh = whh_ref[...]

    # ---- Serial recurrence: only h @ W_hh^T remains on the critical path.
    # h and c are loop-carried VALUES (one (8,128) f32 vreg each) -> no VMEM
    # store/load on the serial chain.
    def step(t, carry):
        h, c = carry
        row0 = pl.multiple_of(t * B, B)                  # sublane-aligned
        gates = xw_scr[pl.ds(row0, B), :] + jnp.dot(
            h.astype(matmul_dtype), whh,
            preferred_element_type=jnp.float32)          # (B, 4H), f32

        # Gate layout is [i, f, o | g]: one contiguous sigmoid, one tanh.
        sig = jax.nn.sigmoid(gates[:, :3 * H])
        i_g = sig[:, 0 * H:1 * H]
        f_g = sig[:, 1 * H:2 * H]
        o_g = sig[:, 2 * H:3 * H]
        g_g = jnp.tanh(gates[:, 3 * H:4 * H])

        c_new = f_g * c + i_g * g_g
        h_new = o_g * jnp.tanh(c_new)
        return h_new, c_new

    h0 = jnp.zeros((B, H), jnp.float32)
    c0 = jnp.zeros((B, H), jnp.float32)
    h_last, _ = lax.fori_loop(0, seq_len, step, (h0, c0), unroll=unroll)

    # Lane-dense (B, H) output; the tiny (H, 2) FC runs in XLA outside.
    hlast_ref[...] = h_last


def lstm_model_forward(token_ids, params, matmul_dtype=jnp.bfloat16,
                       max_unroll=8):
    """token_ids: (B, T) int32.  Returns logits (B, output_dim)."""
    emb = params["embedding"]            # (V, E)   float32
    wih_t = params["w_ih_t"]             # (E, 4H)  float32, [i,f,o,g] cols
    whh_t = params["w_hh_t"]             # (H, 4H)  float32, [i,f,o,g] cols
    b = params["b"]                      # (1, 4H)  float32 = b_ih + b_hh
    wfc_t = params["w_fc_t"]             # (H, O)
    bfc = params["b_fc"]                 # (1, O)

    B, T = token_ids.shape
    E = emb.shape[1]
    H = whh_t.shape[0]

    # Glue (XLA): embedding gather, then time-major rows (row index = t*B + b)
    # so the kernel addresses timestep t as a contiguous sublane-aligned block.
    # Pre-cast x and the weights to the MXU operand dtype here (not in-kernel).
    x = jnp.take(emb, token_ids, axis=0)                              # (B,T,E)
    x = jnp.transpose(x, (1, 0, 2)).reshape(T * B, E).astype(matmul_dtype)
    wih = wih_t.astype(matmul_dtype)
    whh = whh_t.astype(matmul_dtype)

    # VMEM guard: the (T*B, 4H) f32 pre-activation scratch grows with T*B and
    # v7x only has 64 MiB physical VMEM (32 MiB default scoped).  For long
    # production sequences, chunk the input projection over time instead.
    xw_bytes = T * B * 4 * H * 4
    assert xw_bytes < 16 * 1024 * 1024, (
        "xw scratch too large for VMEM; chunk the input projection over time")

    unroll = max(1, min(max_unroll, T))   # partial unroll for long sequences
    kernel = functools.partial(
        lstm_recurrence_kernel,
        seq_len=T, batch=B, hidden_dim=H,
        matmul_dtype=matmul_dtype, unroll=unroll)

    vmem = pltpu.MemorySpace.VMEM
    h_last = pl.pallas_call(
        kernel,
        out_shape=jax.ShapeDtypeStruct((B, H), jnp.float32),
        # no grid: single invocation; whole arrays explicitly resident in VMEM.
        in_specs=[pl.BlockSpec(memory_space=vmem)] * 4,
        out_specs=pl.BlockSpec(memory_space=vmem),
        scratch_shapes=[
            pltpu.VMEM((T * B, 4 * H), jnp.float32),  # pre-activations, all t
        ],
    )(x, wih, whh, b)
    # NOTE: on v7x, >=2 independent batch shards could be split across the two
    # TensorCores with a leading "parallel" grid axis; not worth it at B=8.

    # Dropout is identity at inference. The (H, O=2) FC is left to XLA: inside
    # the kernel it would be a pathological MXU shape with masked (non-lane-
    # dense) stores, and it is trivially cheap here.
    return h_last @ wfc_t + bfc


def reference_forward(token_ids, params):
    """Pure-JAX reference (lax.scan LSTM, all f32) for correctness check.

    Uses the same [i, f, o, g] gate-column layout as the stored params.
    """
    emb = params["embedding"]
    x = jnp.take(emb, token_ids, axis=0)          # (B, T, E)
    B, T, E = x.shape
    H = params["w_hh_t"].shape[0]

    def step(carry, x_t):
        h, c = carry
        gates = x_t @ params["w_ih_t"] + h @ params["w_hh_t"] + params["b"][0]
        i = jax.nn.sigmoid(gates[:, 0 * H:1 * H])
        f = jax.nn.sigmoid(gates[:, 1 * H:2 * H])
        o = jax.nn.sigmoid(gates[:, 2 * H:3 * H])
        g = jnp.tanh(gates[:, 3 * H:4 * H])
        c = f * c + i * g
        h = o * jnp.tanh(c)
        return (h, c), None

    h0 = jnp.zeros((B, H), jnp.float32)
    c0 = jnp.zeros((B, H), jnp.float32)
    (h_last, _), _ = jax.lax.scan(step, (h0, c0), jnp.transpose(x, (1, 0, 2)))
    return h_last @ params["w_fc_t"] + params["b_fc"]


def _pytorch_ifgo_to_ifog(w):
    """Permute the 4H leading rows from PyTorch [i,f,g,o] to kernel [i,f,o,g]."""
    i, f, g, o = jnp.split(w, 4, axis=0)
    return jnp.concatenate([i, f, o, g], axis=0)


def init_params(key, vocab_size, embedding_dim, hidden_dim, output_dim, pad_idx):
    keys = jax.random.split(key, 7)
    scale = 0.1
    emb = scale * jax.random.normal(keys[0], (vocab_size, embedding_dim), jnp.float32)
    emb = emb.at[pad_idx].set(0.0)  # padding_idx row is zero, as in nn.Embedding
    # Raw weights in PyTorch nn.LSTM layout: rows blocked [i, f, g, o].
    w_ih = scale * jax.random.normal(keys[1], (4 * hidden_dim, embedding_dim), jnp.float32)
    w_hh = scale * jax.random.normal(keys[2], (4 * hidden_dim, hidden_dim), jnp.float32)
    b_ih = scale * jax.random.normal(keys[3], (4 * hidden_dim,), jnp.float32)
    b_hh = scale * jax.random.normal(keys[4], (4 * hidden_dim,), jnp.float32)
    w_fc = scale * jax.random.normal(keys[5], (output_dim, hidden_dim), jnp.float32)
    b_fc = scale * jax.random.normal(keys[6], (output_dim,), jnp.float32)
    # Store in kernel-friendly [i, f, o, g] column order, weights transposed.
    w_ih_ifog = _pytorch_ifgo_to_ifog(w_ih)
    w_hh_ifog = _pytorch_ifgo_to_ifog(w_hh)
    b_ifog = _pytorch_ifgo_to_ifog((b_ih + b_hh)[:, None])[:, 0]
    return {
        "embedding": emb,
        "w_ih_t": w_ih_ifog.T,                 # (E, 4H)
        "w_hh_t": w_hh_ifog.T,                 # (H, 4H)
        "b": b_ifog[None, :],                  # (1, 4H)
        "w_fc_t": w_fc.T,                      # (H, O)
        "b_fc": b_fc[None, :],                 # (1, O)
    }


if __name__ == "__main__":
    # Small shapes consistent with the module's forward
    vocab_size = 100
    embedding_dim = 64
    hidden_dim = 128
    output_dim = 2
    pad_idx = 0
    batch = 8
    seq_len = 8

    key = jax.random.PRNGKey(0)
    k_params, k_tokens = jax.random.split(key)
    params = init_params(k_params, vocab_size, embedding_dim, hidden_dim,
                         output_dim, pad_idx)
    token_ids = jax.random.randint(k_tokens, (batch, seq_len), 0, vocab_size,
                                   dtype=jnp.int32)

    ref = reference_forward(token_ids, params)

    # Full-precision-operand kernel: tight check against the f32 scan reference.
    out_f32 = lstm_model_forward(token_ids, params, matmul_dtype=jnp.float32)
    out_f32 = jax.block_until_ready(out_f32)
    assert out_f32.shape == (batch, output_dim)
    assert jnp.allclose(out_f32, ref, atol=5e-4, rtol=5e-4), (
        f"f32 mismatch: max abs err {jnp.max(jnp.abs(out_f32 - ref))}")

    # bf16 MXU-operand kernel (production default; f32 accumulation + f32 gate
    # math everywhere): looser tolerance vs the f32 reference.
    out_bf16 = lstm_model_forward(token_ids, params, matmul_dtype=jnp.bfloat16)
    out_bf16 = jax.block_until_ready(out_bf16)
    assert out_bf16.shape == (batch, output_dim)
    assert jnp.allclose(out_bf16, ref, atol=3e-2, rtol=3e-2), (
        f"bf16 mismatch: max abs err {jnp.max(jnp.abs(out_bf16 - ref))}")

    print("KERNEL_OK")
</pallas_src>

<mosaic_0001>
module attributes {stable_mosaic.version = 11 : i64} {
  func.func @lstm_recurrence_kernel(%arg0: memref<64x64xf32, #tpu.memory_space<vmem>>, %arg1: memref<64x512xf32, #tpu.memory_space<vmem>>, %arg2: memref<128x512xf32, #tpu.memory_space<vmem>>, %arg3: memref<1x512xf32, #tpu.memory_space<vmem>>, %arg4: memref<8x128xf32, #tpu.memory_space<vmem>>, %arg5: memref<64x512xf32, #tpu.memory_space<vmem>>) attributes {dimension_semantics = [], scalar_prefetch = 0 : i64, scratch_operands = 1 : i64, tpu.core_type = #tpu.core_type<tc>} {
    %c0 = arith.constant 0 : index
    %c0_0 = arith.constant 0 : index
    %0 = vector.load %arg0[%c0, %c0_0] : memref<64x64xf32, #tpu.memory_space<vmem>>, vector<64x64xf32>
    %c0_1 = arith.constant 0 : index
    %c0_2 = arith.constant 0 : index
    %1 = vector.load %arg1[%c0_1, %c0_2] : memref<64x512xf32, #tpu.memory_space<vmem>>, vector<64x512xf32>
    %cst = arith.constant dense<0.000000e+00> : vector<64x512xf32>
    %2 = tpu.matmul %0, %1, %cst {dimension_numbers = #tpu.dot_dimension_numbers<[1], [0], [0], [1], [0, 0, 1, 1], [], []>} : vector<64x64xf32>, vector<64x512xf32>, vector<64x512xf32> -> vector<64x512xf32>
    %c0_3 = arith.constant 0 : index
    %c0_4 = arith.constant 0 : index
    %3 = vector.load %arg3[%c0_3, %c0_4] : memref<1x512xf32, #tpu.memory_space<vmem>>, vector<1x512xf32>
    %4 = vector.broadcast %3 : vector<1x512xf32> to vector<64x512xf32>
    %5 = arith.addf %2, %4 : vector<64x512xf32>
    %c0_5 = arith.constant 0 : index
    %c0_6 = arith.constant 0 : index
    %6 = vector.load %arg5[%c0_5, %c0_6] : memref<64x512xf32, #tpu.memory_space<vmem>>, vector<64x512xf32>
    tpu.vector_store %arg5[%c0_5, %c0_6], %5 {strides = array<i32>} : memref<64x512xf32, #tpu.memory_space<vmem>>, vector<64x512xf32>,
    %c0_7 = arith.constant 0 : index
    %c0_8 = arith.constant 0 : index
    %7 = vector.load %arg2[%c0_7, %c0_8] : memref<128x512xf32, #tpu.memory_space<vmem>>, vector<128x512xf32>
    %cst_9 = arith.constant 0.000000e+00 : f32
    %8 = vector.broadcast %cst_9 : f32 to vector<8x128xf32>
    %cst_10 = arith.constant 0.000000e+00 : f32
    %9 = vector.broadcast %cst_10 : f32 to vector<8x128xf32>
    %c0_i32 = arith.constant 0 : i32
    %c8_i32 = arith.constant 8 : i32
    %10 = arith.muli %c0_i32, %c8_i32 : i32
    %11 = tpu.assume_multiple %10, 8 : i32
    %12 = arith.index_cast %11 : i32 to index
    %c0_11 = arith.constant 0 : index
    %13 = vector.load %arg5[%12, %c0_11] : memref<64x512xf32, #tpu.memory_space<vmem>>, vector<8x512xf32>
    %cst_12 = arith.constant dense<0.000000e+00> : vector<8x512xf32>
    %14 = tpu.matmul %8, %7, %cst_12 {dimension_numbers = #tpu.dot_dimension_numbers<[1], [0], [0], [1], [0, 0, 1, 1], [], []>} : vector<8x128xf32>, vector<128x512xf32>, vector<8x512xf32> -> vector<8x512xf32>
    %15 = arith.addf %13, %14 : vector<8x512xf32>
    %16 = vector.extract_strided_slice %15 {offsets = [0, 0], sizes = [8, 384], strides = [1, 1]} : vector<8x512xf32> to vector<8x384xf32>
    %17 = arith.negf %16 : vector<8x384xf32>
    %18 = math.exp %17 : vector<8x384xf32>
    %cst_13 = arith.constant 1.000000e+00 : f32
    %19 = vector.broadcast %cst_13 : f32 to vector<8x384xf32>
    %20 = arith.addf %19, %18 : vector<8x384xf32>
    %21 = arith.divf %19, %20 : vector<8x384xf32>
    %22 = vector.extract_strided_slice %21 {offsets = [0, 0], sizes = [8, 128], strides = [1, 1]} : vector<8x384xf32> to vector<8x128xf32>
    %23 = vector.extract_strided_slice %21 {offsets = [0, 128], sizes = [8, 128], strides = [1, 1]} : vector<8x384xf32> to vector<8x128xf32>
    %24 = vector.extract_strided_slice %21 {offsets = [0, 256], sizes = [8, 128], strides = [1, 1]} : vector<8x384xf32> to vector<8x128xf32>
    %25 = vector.extract_strided_slice %15 {offsets = [0, 384], sizes = [8, 128], strides = [1, 1]} : vector<8x512xf32> to vector<8x128xf32>
    %26 = math.tanh %25 : vector<8x128xf32>
    %27 = arith.mulf %23, %9 : vector<8x128xf32>
    %28 = arith.mulf %22, %26 : vector<8x128xf32>
    %29 = arith.addf %27, %28 : vector<8x128xf32>
    %30 = math.tanh %29 : vector<8x128xf32>
    %31 = arith.mulf %24, %30 : vector<8x128xf32>
    %c1_i32 = arith.constant 1 : i32
    %c8_i32_14 = arith.constant 8 : i32
    %32 = arith.muli %c1_i32, %c8_i32_14 : i32
    %33 = tpu.assume_multiple %32, 8 : i32
    %34 = arith.index_cast %33 : i32 to index
    %c0_15 = arith.constant 0 : index
    %35 = vector.load %arg5[%34, %c0_15] : memref<64x512xf32, #tpu.memory_space<vmem>>, vector<8x512xf32>
    %cst_16 = arith.constant dense<0.000000e+00> : vector<8x512xf32>
    %36 = tpu.matmul %31, %7, %cst_16 {dimension_numbers = #tpu.dot_dimension_numbers<[1], [0], [0], [1], [0, 0, 1, 1], [], []>} : vector<8x128xf32>, vector<128x512xf32>, vector<8x512xf32> -> vector<8x512xf32>
    %37 = arith.addf %35, %36 : vector<8x512xf32>
    %38 = vector.extract_strided_slice %37 {offsets = [0, 0], sizes = [8, 384], strides = [1, 1]} : vector<8x512xf32> to vector<8x384xf32>
    %39 = arith.negf %38 : vector<8x384xf32>
    %40 = math.exp %39 : vector<8x384xf32>
    %cst_17 = arith.constant 1.000000e+00 : f32
    %41 = vector.broadcast %cst_17 : f32 to vector<8x384xf32>
    %42 = arith.addf %41, %40 : vector<8x384xf32>
    %43 = arith.divf %41, %42 : vector<8x384xf32>
    %44 = vector.extract_strided_slice %43 {offsets = [0, 0], sizes = [8, 128], strides = [1, 1]} : vector<8x384xf32> to vector<8x128xf32>
    %45 = vector.extract_strided_slice %43 {offsets = [0, 128], sizes = [8, 128], strides = [1, 1]} : vector<8x384xf32> to vector<8x128xf32>
    %46 = vector.extract_strided_slice %43 {offsets = [0, 256], sizes = [8, 128], strides = [1, 1]} : vector<8x384xf32> to vector<8x128xf32>
    %47 = vector.extract_strided_slice %37 {offsets = [0, 384], sizes = [8, 128], strides = [1, 1]} : vector<8x512xf32> to vector<8x128xf32>
    %48 = math.tanh %47 : vector<8x128xf32>
    %49 = arith.mulf %45, %29 : vector<8x128xf32>
    %50 = arith.mulf %44, %48 : vector<8x128xf32>
    %51 = arith.addf %49, %50 : vector<8x128xf32>
    %52 = math.tanh %51 : vector<8x128xf32>
    %53 = arith.mulf %46, %52 : vector<8x128xf32>
    %c2_i32 = arith.constant 2 : i32
    %c8_i32_18 = arith.constant 8 : i32
    %54 = arith.muli %c2_i32, %c8_i32_18 : i32
    %55 = tpu.assume_multiple %54, 8 : i32
    %56 = arith.index_cast %55 : i32 to index
    %c0_19 = arith.constant 0 : index
    %57 = vector.load %arg5[%56, %c0_19] : memref<64x512xf32, #tpu.memory_space<vmem>>, vector<8x512xf32>
    %cst_20 = arith.constant dense<0.000000e+00> : vector<8x512xf32>
    %58 = tpu.matmul %53, %7, %cst_20 {dimension_numbers = #tpu.dot_dimension_numbers<[1], [0], [0], [1], [0, 0, 1, 1], [], []>} : vector<8x128xf32>, vector<128x512xf32>, vector<8x512xf32> -> vector<8x512xf32>
    %59 = arith.addf %57, %58 : vector<8x512xf32>
    %60 = vector.extract_strided_slice %59 {offsets = [0, 0], sizes = [8, 384], strides = [1, 1]} : vector<8x512xf32> to vector<8x384xf32>
    %61 = arith.negf %60 : vector<8x384xf32>
    %62 = math.exp %61 : vector<8x384xf32>
    %cst_21 = arith.constant 1.000000e+00 : f32
    %63 = vector.broadcast %cst_21 : f32 to vector<8x384xf32>
    %64 = arith.addf %63, %62 : vector<8x384xf32>
    %65 = arith.divf %63, %64 : vector<8x384xf32>
    %66 = vector.extract_strided_slice %65 {offsets = [0, 0], sizes = [8, 128], strides = [1, 1]} : vector<8x384xf32> to vector<8x128xf32>
    %67 = vector.extract_strided_slice %65 {offsets = [0, 128], sizes = [8, 128], strides = [1, 1]} : vector<8x384xf32> to vector<8x128xf32>
    %68 = vector.extract_strided_slice %65 {offsets = [0, 256], sizes = [8, 128], strides = [1, 1]} : vector<8x384xf32> to vector<8x128xf32>
    %69 = vector.extract_strided_slice %59 {offsets = [0, 384], sizes = [8, 128], strides = [1, 1]} : vector<8x512xf32> to vector<8x128xf32>
    %70 = math.tanh %69 : vector<8x128xf32>
    %71 = arith.mulf %67, %51 : vector<8x128xf32>
    %72 = arith.mulf %66, %70 : vector<8x128xf32>
    %73 = arith.addf %71, %72 : vector<8x128xf32>
    %74 = math.tanh %73 : vector<8x128xf32>
    %75 = arith.mulf %68, %74 : vector<8x128xf32>
    %c3_i32 = arith.constant 3 : i32
    %c8_i32_22 = arith.constant 8 : i32
    %76 = arith.muli %c3_i32, %c8_i32_22 : i32
    %77 = tpu.assume_multiple %76, 8 : i32
    %78 = arith.index_cast %77 : i32 to index
    %c0_23 = arith.constant 0 : index
    %79 = vector.load %arg5[%78, %c0_23] : memref<64x512xf32, #tpu.memory_space<vmem>>, vector<8x512xf32>
    %cst_24 = arith.constant dense<0.000000e+00> : vector<8x512xf32>
    %80 = tpu.matmul %75, %7, %cst_24 {dimension_numbers = #tpu.dot_dimension_numbers<[1], [0], [0], [1], [0, 0, 1, 1], [], []>} : vector<8x128xf32>, vector<128x512xf32>, vector<8x512xf32> -> vector<8x512xf32>
    %81 = arith.addf %79, %80 : vector<8x512xf32>
    %82 = vector.extract_strided_slice %81 {offsets = [0, 0], sizes = [8, 384], strides = [1, 1]} : vector<8x512xf32> to vector<8x384xf32>
    %83 = arith.negf %82 : vector<8x384xf32>
    %84 = math.exp %83 : vector<8x384xf32>
    %cst_25 = arith.constant 1.000000e+00 : f32
    %85 = vector.broadcast %cst_25 : f32 to vector<8x384xf32>
    %86 = arith.addf %85, %84 : vector<8x384xf32>
    %87 = arith.divf %85, %86 : vector<8x384xf32>
    %88 = vector.extract_strided_slice %87 {offsets = [0, 0], sizes = [8, 128], strides = [1, 1]} : vector<8x384xf32> to vector<8x128xf32>
    %89 = vector.extract_strided_slice %87 {offsets = [0, 128], sizes = [8, 128], strides = [1, 1]} : vector<8x384xf32> to vector<8x128xf32>
    %90 = vector.extract_strided_slice %87 {offsets = [0, 256], sizes = [8, 128], strides = [1, 1]} : vector<8x384xf32> to vector<8x128xf32>
    %91 = vector.extract_strided_slice %81 {offsets = [0, 384], sizes = [8, 128], strides = [1, 1]} : vector<8x512xf32> to vector<8x128xf32>
    %92 = math.tanh %91 : vector<8x128xf32>
    %93 = arith.mulf %89, %73 : vector<8x128xf32>
    %94 = arith.mulf %88, %92 : vector<8x128xf32>
    %95 = arith.addf %93, %94 : vector<8x128xf32>
    %96 = math.tanh %95 : vector<8x128xf32>
    %97 = arith.mulf %90, %96 : vector<8x128xf32>
    %c4_i32 = arith.constant 4 : i32
    %c8_i32_26 = arith.constant 8 : i32
    %98 = arith.muli %c4_i32, %c8_i32_26 : i32
    %99 = tpu.assume_multiple %98, 8 : i32
    %100 = arith.index_cast %99 : i32 to index
    %c0_27 = arith.constant 0 : index
    %101 = vector.load %arg5[%100, %c0_27] : memref<64x512xf32, #tpu.memory_space<vmem>>, vector<8x512xf32>
    %cst_28 = arith.constant dense<0.000000e+00> : vector<8x512xf32>
    %102 = tpu.matmul %97, %7, %cst_28 {dimension_numbers = #tpu.dot_dimension_numbers<[1], [0], [0], [1], [0, 0, 1, 1], [], []>} : vector<8x128xf32>, vector<128x512xf32>, vector<8x512xf32> -> vector<8x512xf32>
    %103 = arith.addf %101, %102 : vector<8x512xf32>
    %104 = vector.extract_strided_slice %103 {offsets = [0, 0], sizes = [8, 384], strides = [1, 1]} : vector<8x512xf32> to vector<8x384xf32>
    %105 = arith.negf %104 : vector<8x384xf32>
    %106 = math.exp %105 : vector<8x384xf32>
    %cst_29 = arith.constant 1.000000e+00 : f32
    %107 = vector.broadcast %cst_29 : f32 to vector<8x384xf32>
    %108 = arith.addf %107, %106 : vector<8x384xf32>
    %109 = arith.divf %107, %108 : vector<8x384xf32>
    %110 = vector.extract_strided_slice %109 {offsets = [0, 0], sizes = [8, 128], strides = [1, 1]} : vector<8x384xf32> to vector<8x128xf32>
    %111 = vector.extract_strided_slice %109 {offsets = [0, 128], sizes = [8, 128], strides = [1, 1]} : vector<8x384xf32> to vector<8x128xf32>
    %112 = vector.extract_strided_slice %109 {offsets = [0, 256], sizes = [8, 128], strides = [1, 1]} : vector<8x384xf32> to vector<8x128xf32>
    %113 = vector.extract_strided_slice %103 {offsets = [0, 384], sizes = [8, 128], strides = [1, 1]} : vector<8x512xf32> to vector<8x128xf32>
    %114 = math.tanh %113 : vector<8x128xf32>
    %115 = arith.mulf %111, %95 : vector<8x128xf32>
    %116 = arith.mulf %110, %114 : vector<8x128xf32>
    %117 = arith.addf %115, %116 : vector<8x128xf32>
    %118 = math.tanh %117 : vector<8x128xf32>
    %119 = arith.mulf %112, %118 : vector<8x128xf32>
    %c5_i32 = arith.constant 5 : i32
    %c8_i32_30 = arith.constant 8 : i32
    %120 = arith.muli %c5_i32, %c8_i32_30 : i32
    %121 = tpu.assume_multiple %120, 8 : i32
    %122 = arith.index_cast %121 : i32 to index
    %c0_31 = arith.constant 0 : index
    %123 = vector.load %arg5[%122, %c0_31] : memref<64x512xf32, #tpu.memory_space<vmem>>, vector<8x512xf32>
    %cst_32 = arith.constant dense<0.000000e+00> : vector<8x512xf32>
    %124 = tpu.matmul %119, %7, %cst_32 {dimension_numbers = #tpu.dot_dimension_numbers<[1], [0], [0], [1], [0, 0, 1, 1], [], []>} : vector<8x128xf32>, vector<128x512xf32>, vector<8x512xf32> -> vector<8x512xf32>
    %125 = arith.addf %123, %124 : vector<8x512xf32>
    %126 = vector.extract_strided_slice %125 {offsets = [0, 0], sizes = [8, 384], strides = [1, 1]} : vector<8x512xf32> to vector<8x384xf32>
    %127 = arith.negf %126 : vector<8x384xf32>
    %128 = math.exp %127 : vector<8x384xf32>
    %cst_33 = arith.constant 1.000000e+00 : f32
    %129 = vector.broadcast %cst_33 : f32 to vector<8x384xf32>
    %130 = arith.addf %129, %128 : vector<8x384xf32>
    %131 = arith.divf %129, %130 : vector<8x384xf32>
    %132 = vector.extract_strided_slice %131 {offsets = [0, 0], sizes = [8, 128], strides = [1, 1]} : vector<8x384xf32> to vector<8x128xf32>
    %133 = vector.extract_strided_slice %131 {offsets = [0, 128], sizes = [8, 128], strides = [1, 1]} : vector<8x384xf32> to vector<8x128xf32>
    %134 = vector.extract_strided_slice %131 {offsets = [0, 256], sizes = [8, 128], strides = [1, 1]} : vector<8x384xf32> to vector<8x128xf32>
    %135 = vector.extract_strided_slice %125 {offsets = [0, 384], sizes = [8, 128], strides = [1, 1]} : vector<8x512xf32> to vector<8x128xf32>
    %136 = math.tanh %135 : vector<8x128xf32>
    %137 = arith.mulf %133, %117 : vector<8x128xf32>
    %138 = arith.mulf %132, %136 : vector<8x128xf32>
    %139 = arith.addf %137, %138 : vector<8x128xf32>
    %140 = math.tanh %139 : vector<8x128xf32>
    %141 = arith.mulf %134, %140 : vector<8x128xf32>
    %c6_i32 = arith.constant 6 : i32
    %c8_i32_34 = arith.constant 8 : i32
    %142 = arith.muli %c6_i32, %c8_i32_34 : i32
    %143 = tpu.assume_multiple %142, 8 : i32
    %144 = arith.index_cast %143 : i32 to index
    %c0_35 = arith.constant 0 : index
    %145 = vector.load %arg5[%144, %c0_35] : memref<64x512xf32, #tpu.memory_space<vmem>>, vector<8x512xf32>
    %cst_36 = arith.constant dense<0.000000e+00> : vector<8x512xf32>
    %146 = tpu.matmul %141, %7, %cst_36 {dimension_numbers = #tpu.dot_dimension_numbers<[1], [0], [0], [1], [0, 0, 1, 1], [], []>} : vector<8x128xf32>, vector<128x512xf32>, vector<8x512xf32> -> vector<8x512xf32>
    %147 = arith.addf %145, %146 : vector<8x512xf32>
    %148 = vector.extract_strided_slice %147 {offsets = [0, 0], sizes = [8, 384], strides = [1, 1]} : vector<8x512xf32> to vector<8x384xf32>
    %149 = arith.negf %148 : vector<8x384xf32>
    %150 = math.exp %149 : vector<8x384xf32>
    %cst_37 = arith.constant 1.000000e+00 : f32
    %151 = vector.broadcast %cst_37 : f32 to vector<8x384xf32>
    %152 = arith.addf %151, %150 : vector<8x384xf32>
    %153 = arith.divf %151, %152 : vector<8x384xf32>
    %154 = vector.extract_strided_slice %153 {offsets = [0, 0], sizes = [8, 128], strides = [1, 1]} : vector<8x384xf32> to vector<8x128xf32>
    %155 = vector.extract_strided_slice %153 {offsets = [0, 128], sizes = [8, 128], strides = [1, 1]} : vector<8x384xf32> to vector<8x128xf32>
    %156 = vector.extract_strided_slice %153 {offsets = [0, 256], sizes = [8, 128], strides = [1, 1]} : vector<8x384xf32> to vector<8x128xf32>
    %157 = vector.extract_strided_slice %147 {offsets = [0, 384], sizes = [8, 128], strides = [1, 1]} : vector<8x512xf32> to vector<8x128xf32>
    %158 = math.tanh %157 : vector<8x128xf32>
    %159 = arith.mulf %155, %139 : vector<8x128xf32>
    %160 = arith.mulf %154, %158 : vector<8x128xf32>
    %161 = arith.addf %159, %160 : vector<8x128xf32>
    %162 = math.tanh %161 : vector<8x128xf32>
    %163 = arith.mulf %156, %162 : vector<8x128xf32>
    %c7_i32 = arith.constant 7 : i32
    %c8_i32_38 = arith.constant 8 : i32
    %164 = arith.muli %c7_i32, %c8_i32_38 : i32
    %165 = tpu.assume_multiple %164, 8 : i32
    %166 = arith.index_cast %165 : i32 to index
    %c0_39 = arith.constant 0 : index
    %167 = vector.load %arg5[%166, %c0_39] : memref<64x512xf32, #tpu.memory_space<vmem>>, vector<8x512xf32>
    %cst_40 = arith.constant dense<0.000000e+00> : vector<8x512xf32>
    %168 = tpu.matmul %163, %7, %cst_40 {dimension_numbers = #tpu.dot_dimension_numbers<[1], [0], [0], [1], [0, 0, 1, 1], [], []>} : vector<8x128xf32>, vector<128x512xf32>, vector<8x512xf32> -> vector<8x512xf32>
    %169 = arith.addf %167, %168 : vector<8x512xf32>
    %170 = vector.extract_strided_slice %169 {offsets = [0, 0], sizes = [8, 384], strides = [1, 1]} : vector<8x512xf32> to vector<8x384xf32>
    %171 = arith.negf %170 : vector<8x384xf32>
    %172 = math.exp %171 : vector<8x384xf32>
    %cst_41 = arith.constant 1.000000e+00 : f32
    %173 = vector.broadcast %cst_41 : f32 to vector<8x384xf32>
    %174 = arith.addf %173, %172 : vector<8x384xf32>
    %175 = arith.divf %173, %174 : vector<8x384xf32>
    %176 = vector.extract_strided_slice %175 {offsets = [0, 0], sizes = [8, 128], strides = [1, 1]} : vector<8x384xf32> to vector<8x128xf32>
    %177 = vector.extract_strided_slice %175 {offsets = [0, 128], sizes = [8, 128], strides = [1, 1]} : vector<8x384xf32> to vector<8x128xf32>
    %178 = vector.extract_strided_slice %175 {offsets = [0, 256], sizes = [8, 128], strides = [1, 1]} : vector<8x384xf32> to vector<8x128xf32>
    %179 = vector.extract_strided_slice %169 {offsets = [0, 384], sizes = [8, 128], strides = [1, 1]} : vector<8x512xf32> to vector<8x128xf32>
    %180 = math.tanh %179 : vector<8x128xf32>
    %181 = arith.mulf %177, %161 : vector<8x128xf32>
    %182 = arith.mulf %176, %180 : vector<8x128xf32>
    %183 = arith.addf %181, %182 : vector<8x128xf32>
    %184 = math.tanh %183 : vector<8x128xf32>
    %185 = arith.mulf %178, %184 : vector<8x128xf32>
    %c8_i32_42 = arith.constant 8 : i32
    %c0_43 = arith.constant 0 : index
    %c0_44 = arith.constant 0 : index
    %186 = vector.load %arg4[%c0_43, %c0_44] : memref<8x128xf32, #tpu.memory_space<vmem>>, vector<8x128xf32>
    tpu.vector_store %arg4[%c0_43, %c0_44], %185 {strides = array<i32>} : memref<8x128xf32, #tpu.memory_space<vmem>>, vector<8x128xf32>,
    return
  }
}

</mosaic_0001>

<bundles_post_ra>
// kernel: tpu_custom_call.1
= control target key start
LH: loop header
LB: loop body
LE: loop exit
PB: predicated region body
PF: predicated region fallthrough
CT: control target
= control target key end

     0   :  { %9 = vsyncpa [#allocation4], 0  ;;  %s3312_s0 = inlined_call_operand.hbm [shape: f32[64,64], index: 0, kind: input, shape index: {}]   ;;  %s3313_s1 = inlined_call_operand.hbm [shape: f32[64,512], index: 1, kind: input, shape index: {}]   ;;  %s3314_s2 = inlined_call_operand.hbm [shape: f32[128,512], index: 2, kind: input, shape index: {}]   ;;  %s3315_s3 = inlined_call_operand.vmem [shape: f32[1,512], index: 3, kind: input, shape index: {}]   ;;  %s3316_s4 = inlined_call_operand.hbm [shape: f32[8,128], index: 4, kind: output, shape index: {}]  }
   0x1   :  { %10 = vsyncpa [#allocation7], 0 }
   0x2   :  { %11 = vsyncpa [#allocation5], 0  ;;  %s2787_s15 = smov [#allocation6]   ;;  %s2693_s19 = scalar_lea.hbm %s3313_s1, 4096 }
   0x3   :  { %s29_s16 = sshll.u32 %s2787_s15, 4  ;;  %p2694_p0 = scmp.ne.s32.totalorder %s3313_s1, %s2693_s19  ;;  %s30_s16 = int_to_ptr.vmem [resolvable:$true] %s29_s16 }
   0x4   :  { %p2697_p1 = scmp.lt.u32.totalorder %s2693_s19, %s3313_s1 }
   0x6   :  { %p2699_p2 = pnand %p2697_p1, %p2694_p0 }
   0x8   :  { %2702 = shalt.err (!%p2699_p2)
}
   0x9   :  { %s2703_s24 = scalar_lea.vmem %s30_s16, 4096  ;;  %p2708_p4 = scmp.lt.s32.totalorder %s30_s16, %s30_s16 }
   0xa   :  { %p2704_p3 = scmp.ne.s32.totalorder %s30_s16, %s2703_s24  ;;  %p2709_p5 = scmp.lt.s32.totalorder %s2703_s24, %s2703_s24 }
   0xc   :  { %p2710_p6 = por %p2709_p5, %p2708_p4 }
   0xe   :  { %p2711_p7 = pnand %p2710_p6, %p2704_p3 }
  0x10   :  { %2714 = shalt.err (!%p2711_p7)
}
  0x11   :  { %s2788_s25 = smov 512   ;;  %s2789_s26 = smov 32  }
  0x12   :  { %35 = dma.hbm_to_vmem [thread:$0]  %s3313_s1, 4096, %s30_s16, [#allocation7], %s2788_s25, %s2788_s25, %s2789_s26  }
  0x13   :  { %s2790_s29 = smov [#allocation3]   ;;  %s2715_s7 = scalar_lea.hbm %s3312_s0, 1024 }
  0x14   :  { %s17_s30 = sshll.u32 %s2790_s29, 4  ;;  %p2716_p8 = scmp.ne.s32.totalorder %s3312_s0, %s2715_s7  ;;  %s18_s30 = int_to_ptr.vmem [resolvable:$true] %s17_s30 }
  0x15   :  { %p2719_p9 = scmp.lt.u32.totalorder %s2715_s7, %s3312_s0 }
  0x17   :  { %p2721_p10 = pnand %p2719_p9, %p2716_p8 }
  0x19   :  { %2724 = shalt.err (!%p2721_p10)
}
  0x1a   :  { %s2725_s12 = scalar_lea.vmem %s18_s30, 1024  ;;  %p2730_p12 = scmp.lt.s32.totalorder %s18_s30, %s18_s30 }
  0x1b   :  { %p2726_p11 = scmp.ne.s32.totalorder %s18_s30, %s2725_s12  ;;  %p2731_p13 = scmp.lt.s32.totalorder %s2725_s12, %s2725_s12 }
  0x1d   :  { %p2732_p0 = por %p2731_p13, %p2730_p12 }
  0x1f   :  { %p2733_p1 = pnand %p2732_p0, %p2726_p11 }
  0x21   :  { %2736 = shalt.err (!%p2733_p1)
}
  0x22   :  { %s2791_s1 = smov 128   ;;  %s2792_s13 = smov 8  }
  0x23   :  { %23 = dma.hbm_to_vmem [thread:$0]  %s3312_s0, 1024, %s18_s30, [#allocation4], %s2791_s1, %s2791_s1, %s2792_s13  }
  0x24   :  { %s2793_s16 = smov [#allocation8]   ;;  %s2737_s20 = scalar_lea.hbm %s3314_s2, 8192 }
  0x25   :  { %s41_s17 = sshll.u32 %s2793_s16, 4  ;;  %p2738_p2 = scmp.ne.s32.totalorder %s3314_s2, %s2737_s20  ;;  %s42_s17 = int_to_ptr.vmem [resolvable:$true] %s41_s17 }
  0x26   :  { %p2741_p3 = scmp.lt.u32.totalorder %s2737_s20, %s3314_s2 }
  0x28   :  { %p2743_p4 = pnand %p2741_p3, %p2738_p2 }
  0x2a   :  { %2746 = shalt.err (!%p2743_p4)
}
  0x2b   :  { %s2747_s27 = scalar_lea.vmem %s42_s17, 8192  ;;  %p2752_p6 = scmp.lt.s32.totalorder %s42_s17, %s42_s17 }
  0x2c   :  { %p2748_p5 = scmp.ne.s32.totalorder %s42_s17, %s2747_s27  ;;  %p2753_p7 = scmp.lt.s32.totalorder %s2747_s27, %s2747_s27 }
  0x2e   :  { %p2754_p8 = por %p2753_p7, %p2752_p6 }
  0x30   :  { %p2755_p9 = pnand %p2754_p8, %p2748_p5 }
  0x32   :  { %2758 = shalt.err (!%p2755_p9)
}
  0x33   :  { %47 = dma.hbm_to_vmem [thread:$0]  %s3314_s2, 8192, %s42_s17, [#allocation7], %s2788_s25, %s2788_s25, %s2789_s26  }
  0x34   :  { %2781 = dma.done.wait [#allocation4], 1024  }
  0x35   :  { %2782 = vsyncadd [#allocation4], 4294966272 }
  0x36   :  { %2783 = dma.done.wait [#allocation7], 12288  }
  0x37   :  { %2784 = vsyncadd [#allocation7], 4294955008  ;;  %v2794_v0 = vmov 0.0   ;;  %v68_v1 = vld [vmem:[#allocation6 + $0x8] sm:$0xff]  ;;  %v70_v3 = vld [vmem:[#allocation6 + $0x18] sm:$0xff]  ;;  %vm121_vm0 = vcmask 523264  }
  0x38   :  { %210 = vmatprep.mubr.f32.mxu0 %v2794_v0  ;;  %323 = vmatprep.mubr.f32.mxu1 %v2794_v0  ;;  %v72_v2 = vld [vmem:[#allocation6 + $0x28] sm:$0xff]  ;;  %v74_v5 = vld [vmem:[#allocation6 + $0x38] sm:$0xff]  ;;  %v67_v6 = vld [vmem:[#allocation6] sm:$0xff] }
  0x39   :  { %v1948_v4 = vpack.c.bf16 %v72_v2, %v68_v1  ;;  %v71_v7 = vld [vmem:[#allocation6 + $0x20] sm:$0xff]  ;;  %v1964_v8 = vpack.c.bf16 %v74_v5, %v70_v3  ;;  %v69_v10 = vld [vmem:[#allocation6 + $0x10] sm:$0xff]  ;;  %v76_v12 = vld [vmem:[#allocation6 + $0x48] sm:$0xff] }
  0x3a   :  { %v1950_v9 = vpack.c.bf16 %v71_v7, %v67_v6  ;;  %v73_v11 = vld [vmem:[#allocation6 + $0x30] sm:$0xff]  ;;  %v80_v14 = vld [vmem:[#allocation6 + $0x68] sm:$0xff]  ;;  %v78_v15 = vld [vmem:[#allocation6 + $0x58] sm:$0xff] }
  0x3b   :  { %1949 = vmatprep.subr.bf16.mxu0 %v1948_v4  ;;  %v1966_v13 = vpack.c.bf16 %v73_v11, %v69_v10  ;;  %v82_v16 = vld [vmem:[#allocation6 + $0x78] sm:$0xff]  ;;  %1965 = vmatprep.subr.bf16.mxu1 %v1964_v8  ;;  %v1952_v17 = vpack.c.bf16 %v80_v14, %v76_v12  ;;  %v75_v19 = vld [vmem:[#allocation6 + $0x40] sm:$0xff]  ;;  %v77_v21 = vld [vmem:[#allocation6 + $0x50] sm:$0xff] }
  0x3c   :  { %1951 = vmatpush1.bf16.msra.mxu0 %v1950_v9  ;;  %v1968_v18 = vpack.c.bf16 %v82_v16, %v78_v15  ;;  %v79_v20 = vld [vmem:[#allocation6 + $0x60] sm:$0xff]  ;;  %v81_v23 = vld [vmem:[#allocation6 + $0x70] sm:$0xff]  ;;  %v84_v24 = vld [vmem:[#allocation6 + $0x88] sm:$0xff] }
  0x3d   :  { %1967 = vmatpush1.bf16.msra.mxu1 %v1966_v13  ;;  %v1954_v22 = vpack.c.bf16 %v79_v20, %v75_v19  ;;  %v88_v25 = vld [vmem:[#allocation6 + $0xa8] sm:$0xff]  ;;  %1953 = vmatprep.subr.bf16.mxu0 %v1952_v17  ;;  %v1970_v26 = vpack.c.bf16 %v81_v23, %v77_v21  ;;  %v86_v28 = vld [vmem:[#allocation6 + $0x98] sm:$0xff]  ;;  %v83_v30 = vld [vmem:[#allocation6 + $0x80] sm:$0xff] }
  0x3e   :  { %1969 = vmatprep.subr.bf16.mxu1 %v1968_v18  ;;  %v1956_v27 = vpack.c.bf16 %v88_v25, %v84_v24  ;;  %v90_v29 = vld [vmem:[#allocation6 + $0xb8] sm:$0xff]  ;;  %v87_v32 = vld [vmem:[#allocation6 + $0xa0] sm:$0xff]  ;;  %v85_v33 = vld [vmem:[#allocation6 + $0x90] sm:$0xff] }
  0x3f   :  { %v1972_v31 = vpack.c.bf16 %v90_v29, %v86_v28  ;;  %v89_v34 = vld [vmem:[#allocation6 + $0xb0] sm:$0xff]  ;;  %v1958_v35 = vpack.c.bf16 %v87_v32, %v83_v30  ;;  %v92_v36 = vld [vmem:[#allocation6 + $0xc8] sm:$0xff]  ;;  %v94_v38 = vld [vmem:[#allocation6 + $0xd8] sm:$0xff] }
  0x40   :  { %1955 = vmatpush1.bf16.msra.mxu0 %v1954_v22  ;;  %v96_v37 = vld [vmem:[#allocation6 + $0xe8] sm:$0xff]  ;;  %v1974_v39 = vpack.c.bf16 %v89_v34, %v85_v33  ;;  %v98_v41 = vld [vmem:[#allocation6 + $0xf8] sm:$0xff]  ;;  %v91_v42 = vld [vmem:[#allocation6 + $0xc0] sm:$0xff] }
  0x41   :  { %1971 = vmatpush1.bf16.msra.mxu1 %v1970_v26  ;;  %1957 = vmatprep.subr.bf16.mxu0 %v1956_v27  ;;  %v1960_v40 = vpack.c.bf16 %v96_v37, %v92_v36  ;;  %v95_v43 = vld [vmem:[#allocation6 + $0xe0] sm:$0xff]  ;;  %v1976_v44 = vpack.c.bf16 %v98_v41, %v94_v38  ;;  %v93_v45 = vld [vmem:[#allocation6 + $0xd0] sm:$0xff]  ;;  %v405_v47 = vld [vmem:[#allocation8 + $0x8] sm:$0xff] }
  0x42   :  { %1973 = vmatprep.subr.bf16.mxu1 %v1972_v31  ;;  %v97_v46 = vld [vmem:[#allocation6 + $0xf0] sm:$0xff]  ;;  %v409_v48 = vld [vmem:[#allocation8 + $0x28] sm:$0xff]  ;;  %v407_v49 = vld [vmem:[#allocation8 + $0x18] sm:$0xff]  ;;  %v1962_v50 = vpack.c.bf16 %v95_v43, %v91_v42 }
  0x43   :  { %v411_v51 = vld [vmem:[#allocation8 + $0x38] sm:$0xff]  ;;  %v1978_v52 = vpack.c.bf16 %v97_v46, %v93_v45  ;;  %v2865_v53 = vpack.c.bf16 %v409_v48, %v405_v47  ;;  %v404_v54 = vld [vmem:[#allocation8] sm:$0xff]  ;;  %v406_v57 = vld [vmem:[#allocation8 + $0x10] sm:$0xff] }
  0x44   :  { %1959 = vmatpush1.bf16.msra.mxu0 %v1958_v35  ;;  %v408_v55 = vld [vmem:[#allocation8 + $0x20] sm:$0xff]  ;;  %v2867_v56 = vpack.c.bf16 %v411_v51, %v407_v49  ;;  %v410_v58 = vld [vmem:[#allocation8 + $0x30] sm:$0xff]  ;;  %v413_v59 = vld [vmem:[#allocation8 + $0x48] sm:$0xff] }
  0x45   :  { %1975 = vmatpush1.bf16.msra.mxu1 %v1974_v39  ;;  %1961 = vmatprep.subr.bf16.mxu0 %v1960_v40  ;;  %v417_v60 = vld [vmem:[#allocation8 + $0x68] sm:$0xff]  ;;  %v59_v61 = vld [vmem:[#allocation3] sm:$0xff]  ;;  %v2869_v62 = vpack.c.bf16 %v408_v55, %v404_v54  ;;  %v415_v63 = vld [vmem:[#allocation8 + $0x58] sm:$0xff]  ;;  %v2872_v2 = vpack.c.bf16 %v410_v58, %v406_v57 }
  0x46   :  { %1977 = vmatprep.subr.bf16.mxu1 %v1976_v44  ;;  %v419_v1 = vld [vmem:[#allocation8 + $0x78] sm:$0xff]  ;;  %v412_v3 = vld [vmem:[#allocation8 + $0x40] sm:$0xff]  ;;  %v2875_v5 = vpack.c.bf16 %v417_v60, %v413_v59  ;;  %v414_v6 = vld [vmem:[#allocation8 + $0x50] sm:$0xff] }
  0x47   :  { %v416_v4 = vld [vmem:[#allocation8 + $0x60] sm:$0xff]  ;;  %v418_v7 = vld [vmem:[#allocation8 + $0x70] sm:$0xff]  ;;  %v2878_v8 = vpack.c.bf16 %v419_v1, %v415_v63  ;;  %v421_v9 = vld [vmem:[#allocation8 + $0x88] sm:$0xff] }
  0x48   :  { %1963 = vmatpush1.bf16.msra.mxu0 %v1962_v50  ;;  %v425_v10 = vld [vmem:[#allocation8 + $0xa8] sm:$0xff]  ;;  %v2882_v12 = vpack.c.bf16 %v416_v4, %v412_v3  ;;  %v423_v13 = vld [vmem:[#allocation8 + $0x98] sm:$0xff]  ;;  %v2886_v15 = vpack.c.bf16 %v418_v7, %v414_v6  ;;  %v420_v16 = vld [vmem:[#allocation8 + $0x80] sm:$0xff] }
  0x49   :  { %1979 = vmatpush1.bf16.msra.mxu1 %v1978_v52  ;;  %1981 = vmatprep.subr.bf16.mxu0 %v2865_v53  ;;  %v60_v11 = vld [vmem:[#allocation3 + $0x8] sm:$0xff]  ;;  %v427_v14 = vld [vmem:[#allocation8 + $0xb8] sm:$0xff]  ;;  %v424_v17 = vld [vmem:[#allocation8 + $0xa0] sm:$0xff]  ;;  %v2890_v18 = vpack.c.bf16 %v425_v10, %v421_v9 }
  0x4a   :  { %2013 = vmatprep.subr.bf16.mxu1 %v2867_v56  ;;  %v422_v19 = vld [vmem:[#allocation8 + $0x90] sm:$0xff]  ;;  %v2894_v21 = vpack.c.bf16 %v427_v14, %v423_v13  ;;  %v429_v22 = vld [vmem:[#allocation8 + $0xc8] sm:$0xff]  ;;  %v2898_v25 = vpack.c.bf16 %v424_v17, %v420_v16  ;;  %v431_v26 = vld [vmem:[#allocation8 + $0xd8] sm:$0xff] }
  0x4b   :  { %1908 = vmatmul.mubr.msk.f32.vlgmr.msra.gmra.mrb[0].mxu0 %vm121_vm0, %v59_v61  ;;  %v426_v20 = vld [vmem:[#allocation8 + $0xb0] sm:$0xff]  ;;  %v433_v23 = vld [vmem:[#allocation8 + $0xe8] sm:$0xff]  ;;  %v435_v27 = vld [vmem:[#allocation8 + $0xf8] sm:$0xff] }
  0x4c   :  { %1916 = vmatmul.mubr.msk.f32.vlgmr.msra.gmra.mrb[0].mxu1 %vm121_vm0, %v59_v61  ;;  %1983 = vmatpush1.bf16.msra.mxu0 %v2869_v62  ;;  %v61_v24 = vld [vmem:[#allocation3 + $0x10] sm:$0xff]  ;;  %v2902_v28 = vpack.c.bf16 %v426_v20, %v422_v19  ;;  %v428_v29 = vld [vmem:[#allocation8 + $0xc0] sm:$0xff]  ;;  %v2906_v31 = vpack.c.bf16 %v433_v23, %v429_v22  ;;  %v2910_v34 = vpack.c.bf16 %v435_v27, %v431_v26  ;;  %v437_v35 = vld [vmem:[#allocation8 + $0x108] sm:$0xff] }
  0x4d   :  { %2015 = vmatpush1.bf16.msra.mxu1 %v2872_v2  ;;  %216 = vmatprep.mubr.f32.mxu0 %v2794_v0  ;;  %v432_v30 = vld [vmem:[#allocation8 + $0xe0] sm:$0xff]  ;;  %v430_v32 = vld [vmem:[#allocation8 + $0xd0] sm:$0xff]  ;;  %v441_v36 = vld [vmem:[#allocation8 + $0x128] sm:$0xff] }
  0x4e   :  { %329 = vmatprep.mubr.f32.mxu1 %v2794_v0  ;;  %1985 = vmatprep.subr.bf16.mxu0 %v2875_v5  ;;  %v434_v33 = vld [vmem:[#allocation8 + $0xf0] sm:$0xff]  ;;  %v62_v37 = vld [vmem:[#allocation3 + $0x18] sm:$0xff]  ;;  %v2914_v38 = vpack.c.bf16 %v432_v30, %v428_v29  ;;  %v436_v42 = vld [vmem:[#allocation8 + $0x100] sm:$0xff]  ;;  %v2922_v44 = vpack.c.bf16 %v441_v36, %v437_v35 }
  0x4f   :  { %1909 = vmatmul.mubr.msk.f32.gmra.mrb[2].mxu0 %vm121_vm0, %v60_v11  ;;  %2017 = vmatprep.subr.bf16.mxu1 %v2878_v8  ;;  %v439_v39 = vld [vmem:[#allocation8 + $0x118] sm:$0xff]  ;;  %v2918_v41 = vpack.c.bf16 %v434_v33, %v430_v32  ;;  %v440_v43 = vld [vmem:[#allocation8 + $0x120] sm:$0xff]  ;;  %v438_v45 = vld [vmem:[#allocation8 + $0x110] sm:$0xff] }
  0x50   :  { %1917 = vmatmul.mubr.msk.f32.gmra.mrb[2].mxu1 %vm121_vm0, %v60_v11  ;;  %1987 = vmatpush1.bf16.msra.mxu0 %v2882_v12  ;;  %v443_v40 = vld [vmem:[#allocation8 + $0x138] sm:$0xff]  ;;  %v442_v46 = vld [vmem:[#allocation8 + $0x130] sm:$0xff]  ;;  %v445_v48 = vld [vmem:[#allocation8 + $0x148] sm:$0xff]  ;;  %v2930_v51 = vpack.c.bf16 %v440_v43, %v436_v42  ;;  %v101_v43 = vlaneseq }
  0x51   :  { %2019 = vmatpush1.bf16.msra.mxu1 %v2886_v15  ;;  %222 = vmatprep.mubr.f32.mxu0 %v2794_v0  ;;  %v2926_v47 = vpack.c.bf16 %v443_v40, %v439_v39  ;;  %v449_v49 = vld [vmem:[#allocation8 + $0x168] sm:$0xff]  ;;  %v63_v50 = vld [vmem:[#allocation3 + $0x20] sm:$0xff]  ;;  %v447_v52 = vld [vmem:[#allocation8 + $0x158] sm:$0xff]  ;;  %v2934_v55 = vpack.c.bf16 %v442_v46, %v438_v45 }
  0x52   :  { %335 = vmatprep.mubr.f32.mxu1 %v2794_v0  ;;  %1989 = vmatprep.subr.bf16.mxu0 %v2890_v18  ;;  %v451_v54 = vld [vmem:[#allocation8 + $0x178] sm:$0xff]  ;;  %v444_v57 = vld [vmem:[#allocation8 + $0x140] sm:$0xff]  ;;  %v2938_v59 = vpack.c.bf16 %v449_v49, %v445_v48  ;;  %v446_v60 = vld [vmem:[#allocation8 + $0x150] sm:$0xff]  ;;  %v102_v45 = vshrl.u32 %v101_v43, 7 }
  0x53   :  { %1910 = vmatmul.mubr.msk.f32.gmra.mrb[4].mxu0 %vm121_vm0, %v61_v24  ;;  %2021 = vmatprep.subr.bf16.mxu1 %v2894_v21  ;;  %v448_v58 = vld [vmem:[#allocation8 + $0x160] sm:$0xff]  ;;  %v450_v61 = vld [vmem:[#allocation8 + $0x170] sm:$0xff]  ;;  %v2942_v63 = vpack.c.bf16 %v451_v54, %v447_v52  ;;  %v453_v1 = vld [vmem:[#allocation8 + $0x188] sm:$0xff] }
  0x54   :  { %1918 = vmatmul.mubr.msk.f32.gmra.mrb[4].mxu1 %vm121_vm0, %v61_v24  ;;  %1991 = vmatpush1.bf16.msra.mxu0 %v2898_v25  ;;  %v457_v3 = vld [vmem:[#allocation8 + $0x1a8] sm:$0xff]  ;;  %v2946_v6 = vpack.c.bf16 %v448_v58, %v444_v57  ;;  %v455_v7 = vld [vmem:[#allocation8 + $0x198] sm:$0xff]  ;;  %v2950_v10 = vpack.c.bf16 %v450_v61, %v446_v60  ;;  %v452_v11 = vld [vmem:[#allocation8 + $0x180] sm:$0xff]  ;;  %v103_v46 = vsub.s32 0, %v102_v45  ;;  %v107_v49 = vsub.s32 1, %v102_v45 }
  0x55   :  { %2023 = vmatpush1.bf16.msra.mxu1 %v2902_v28  ;;  %228 = vmatprep.mubr.f32.mxu0 %v2794_v0  ;;  %v64_v4 = vld [vmem:[#allocation3 + $0x28] sm:$0xff]  ;;  %v459_v9 = vld [vmem:[#allocation8 + $0x1b8] sm:$0xff]  ;;  %v456_v13 = vld [vmem:[#allocation8 + $0x1a0] sm:$0xff]  ;;  %v2954_v14 = vpack.c.bf16 %v457_v3, %v453_v1  ;;  %v111_v57 = vsub.s32 2, %v102_v45 }
  0x56   :  { %341 = vmatprep.mubr.f32.mxu1 %v2794_v0  ;;  %1993 = vmatprep.subr.bf16.mxu0 %v2906_v31  ;;  %v454_v16 = vld [vmem:[#allocation8 + $0x190] sm:$0xff]  ;;  %v2958_v19 = vpack.c.bf16 %v459_v9, %v455_v7  ;;  %v461_v20 = vld [vmem:[#allocation8 + $0x1c8] sm:$0xff]  ;;  %v2962_v24 = vpack.c.bf16 %v456_v13, %v452_v11  ;;  %v463_v26 = vld [vmem:[#allocation8 + $0x1d8] sm:$0xff]  ;;  %v115_v11 = vsub.s32 3, %v102_v45 }
  0x57   :  { %1911 = vmatmul.mubr.msk.f32.gmra.mrb[6].mxu0 %vm121_vm0, %v62_v37  ;;  %2025 = vmatprep.subr.bf16.mxu1 %v2910_v34  ;;  %v458_v17 = vld [vmem:[#allocation8 + $0x1b0] sm:$0xff]  ;;  %v465_v22 = vld [vmem:[#allocation8 + $0x1e8] sm:$0xff]  ;;  %v467_v27 = vld [vmem:[#allocation8 + $0x1f8] sm:$0xff] }
  0x58   :  { %1919 = vmatmul.mubr.msk.f32.gmra.mrb[6].mxu1 %vm121_vm0, %v62_v37  ;;  %1995 = vmatpush1.bf16.msra.mxu0 %v2914_v38  ;;  %v65_v23 = vld [vmem:[#allocation3 + $0x30] sm:$0xff]  ;;  %v2966_v29 = vpack.c.bf16 %v458_v17, %v454_v16  ;;  %v460_v30 = vld [vmem:[#allocation8 + $0x1c0] sm:$0xff]  ;;  %v2970_v33 = vpack.c.bf16 %v465_v22, %v461_v20  ;;  %v2974_v37 = vpack.c.bf16 %v467_v27, %v463_v26  ;;  %v66_v39 = vld [vmem:[#allocation3 + $0x38] sm:$0xff] }
  0x59   :  { %2027 = vmatpush1.bf16.msra.mxu1 %v2918_v41  ;;  %234 = vmatprep.mubr.f32.mxu0 %v2794_v0  ;;  %v464_v32 = vld [vmem:[#allocation8 + $0x1e0] sm:$0xff]  ;;  %v462_v35 = vld [vmem:[#allocation8 + $0x1d0] sm:$0xff] }
  0x5a   :  { %347 = vmatprep.mubr.f32.mxu1 %v2794_v0  ;;  %1997 = vmatprep.subr.bf16.mxu0 %v2922_v44  ;;  %v466_v36 = vld [vmem:[#allocation8 + $0x1f0] sm:$0xff]  ;;  %v2978_v40 = vpack.c.bf16 %v464_v32, %v460_v30  ;;  %v99_v48 = vld [vmem:[%s3315_s3] sm:$0xf]  ;;  %s2795_s3 = smov [#allocation9]  }
  0x5b   :  { %1912 = vmatmul.mubr.msk.f32.gmra.mrb[8].mxu0 %vm121_vm0, %v63_v50  ;;  %2029 = vmatprep.subr.bf16.mxu1 %v2926_v47  ;;  %v2982_v42 = vpack.c.bf16 %v466_v36, %v462_v35  ;;  %v3036_v52 = vrot.slane %v99_v48, %v107_v49  ;;  %v3040_v7 = vrot.slane %v99_v48, %v111_v57  ;;  %s1891_s26 = sshll.u32 %s2795_s3, 4  ;;  %s1892_s26 = int_to_ptr.vmem [resolvable:$true] %s1891_s26 }
  0x5c   :  { %1920 = vmatmul.mubr.msk.f32.gmra.mrb[8].mxu1 %vm121_vm0, %v63_v50  ;;  %1999 = vmatpush1.bf16.msra.mxu0 %v2930_v51  ;;  %v3034_v50 = vrot.slane %v99_v48, %v103_v46  ;;  %v3043_v16 = vrot.slane %v99_v48, %v115_v11  ;;  %s2759_s29 = scalar_lea.vmem %s1892_s26, 128  ;;  %p2764_p11 = scmp.lt.s32.totalorder %s1892_s26, %s1892_s26 }
  0x5d   :  { %2031 = vmatpush1.bf16.msra.mxu1 %v2934_v55  ;;  %240 = vmatprep.mubr.f32.mxu0 %v2794_v0  ;;  %p2760_p10 = scmp.ne.s32.totalorder %s1892_s26, %s2759_s29  ;;  %p2765_p12 = scmp.lt.s32.totalorder %s2759_s29, %s2759_s29 }
  0x5e   :  { %353 = vmatprep.mubr.f32.mxu1 %v2794_v0  ;;  %2001 = vmatprep.subr.bf16.mxu0 %v2938_v59 }
  0x5f   :  { %1913 = vmatmul.mubr.msk.f32.gmra.mrb[10].mxu0 %vm121_vm0, %v64_v4  ;;  %2033 = vmatprep.subr.bf16.mxu1 %v2942_v63  ;;  %p2766_p13 = por %p2765_p12, %p2764_p11 }
  0x60   :  { %1921 = vmatmul.mubr.msk.f32.gmra.mrb[10].mxu1 %vm121_vm0, %v64_v4  ;;  %2003 = vmatpush1.bf16.msra.mxu0 %v2946_v6 }
  0x61   :  { %2035 = vmatpush1.bf16.msra.mxu1 %v2950_v10  ;;  %246 = vmatprep.mubr.f32.mxu0 %v2794_v0  ;;  %p2767_p0 = pnand %p2766_p13, %p2760_p10 }
  0x62   :  { %359 = vmatprep.mubr.f32.mxu1 %v2794_v0  ;;  %2005 = vmatprep.subr.bf16.mxu0 %v2954_v14 }
  0x63   :  { %1914 = vmatmul.mubr.msk.f32.gmra.mrb[12].mxu0 %vm121_vm0, %v65_v23  ;;  %2037 = vmatprep.subr.bf16.mxu1 %v2958_v19 }
  0x64   :  { %1922 = vmatmul.mubr.msk.f32.gmra.mrb[12].mxu1 %vm121_vm0, %v65_v23  ;;  %2007 = vmatpush1.bf16.msra.mxu0 %v2962_v24 }
  0x65   :  { %2039 = vmatpush1.bf16.msra.mxu1 %v2966_v29  ;;  %252 = vmatprep.mubr.f32.mxu0 %v2794_v0 }
  0x66   :  { %365 = vmatprep.mubr.f32.mxu1 %v2794_v0  ;;  %2009 = vmatprep.subr.bf16.mxu0 %v2970_v33 }
  0x67   :  { %1915 = vmatmul.mubr.msk.f32.gmra.mrb[14].mxu0 %vm121_vm0, %v66_v39  ;;  %2041 = vmatprep.subr.bf16.mxu1 %v2974_v37 }
  0x68   :  { %1923 = vmatmul.mubr.msk.f32.gmra.mrb[14].mxu1 %vm121_vm0, %v66_v39  ;;  %2011 = vmatpush1.bf16.msra.mxu0 %v2978_v40 }
  0x69   :  { %2043 = vmatpush1.bf16.msra.mxu1 %v2982_v42  ;;  %539 = vmatprep.mubr.f32.mxu0 %v2794_v0 }
  0x6a   :  { %610 = vmatprep.mubr.f32.mxu1 %v2794_v0  ;;  %2045 = vmatprep.subr.bf16.mxu0 %v2865_v53 }
  0x6b   :  { %540 = vmatmul.mubr.f32.vlgmr.msra.gmra.mrb[0].mxu0 %v2794_v0  ;;  %2077 = vmatprep.subr.bf16.mxu1 %v2867_v56 }
  0x6c   :  { %611 = vmatmul.mubr.f32.vlgmr.msra.gmra.mrb[0].mxu1 %v2794_v0  ;;  %2047 = vmatpush1.bf16.msra.mxu0 %v2869_v62 }
  0x6d   :  { %2079 = vmatpush1.bf16.msra.mxu1 %v2872_v2  ;;  %2049 = vmatprep.subr.bf16.mxu0 %v2875_v5 }
  0x6e   :  { %2081 = vmatprep.subr.bf16.mxu1 %v2878_v8  ;;  %716 = vmatprep.mubr.f32.mxu0 %v2794_v0 }
  0x6f   :  { %787 = vmatprep.mubr.f32.mxu1 %v2794_v0 }
  0x70   :  { %2051 = vmatpush1.bf16.msra.mxu0 %v2882_v12 }
  0x71   :  { %2083 = vmatpush1.bf16.msra.mxu1 %v2886_v15  ;;  %2053 = vmatprep.subr.bf16.mxu0 %v2890_v18 }
  0x72   :  { %2085 = vmatprep.subr.bf16.mxu1 %v2894_v21 }
  0x74   :  { %2055 = vmatpush1.bf16.msra.mxu0 %v2898_v25 }
  0x75   :  { %2087 = vmatpush1.bf16.msra.mxu1 %v2902_v28  ;;  %2057 = vmatprep.subr.bf16.mxu0 %v2906_v31 }
  0x76   :  { %2089 = vmatprep.subr.bf16.mxu1 %v2910_v34 }
  0x78   :  { %2059 = vmatpush1.bf16.msra.mxu0 %v2914_v38 }
  0x79   :  { %2091 = vmatpush1.bf16.msra.mxu1 %v2918_v41  ;;  %2061 = vmatprep.subr.bf16.mxu0 %v2922_v44 }
  0x7a   :  { %2093 = vmatprep.subr.bf16.mxu1 %v2926_v47 }
  0x7c   :  { %2063 = vmatpush1.bf16.msra.mxu0 %v2930_v51 }
  0x7d   :  { %2095 = vmatpush1.bf16.msra.mxu1 %v2934_v55  ;;  %2065 = vmatprep.subr.bf16.mxu0 %v2938_v59 }
  0x7e   :  { %2097 = vmatprep.subr.bf16.mxu1 %v2942_v63 }
  0x80   :  { %2067 = vmatpush1.bf16.msra.mxu0 %v2946_v6 }
  0x81   :  { %2099 = vmatpush1.bf16.msra.mxu1 %v2950_v10  ;;  %2069 = vmatprep.subr.bf16.mxu0 %v2954_v14 }
  0x82   :  { %2101 = vmatprep.subr.bf16.mxu1 %v2958_v19 }
  0x84   :  { %2071 = vmatpush1.bf16.msra.mxu0 %v2962_v24 }
  0x85   :  { %2103 = vmatpush1.bf16.msra.mxu1 %v2966_v29  ;;  %2073 = vmatprep.subr.bf16.mxu0 %v2970_v33 }
  0x86   :  { %2105 = vmatprep.subr.bf16.mxu1 %v2974_v37 }
  0x88   :  { %2075 = vmatpush1.bf16.msra.mxu0 %v2978_v40 }
  0x89   :  { %2107 = vmatpush1.bf16.msra.mxu1 %v2982_v42  ;;  %2109 = vmatprep.subr.bf16.mxu0 %v2865_v53 }
  0x8a   :  { %2141 = vmatprep.subr.bf16.mxu1 %v2867_v56 }
 0x13e   :  { %v541_v54 = vpop.f32.mrb[0].mxu0 }
 0x13f   :  { %v2492_v58 = vadd.f32 %v541_v54, %v3034_v50  ;;  %v612_v60 = vpop.f32.mrb[0].mxu1  ;;  %v543_v61 = vpop.f32.mrb[1].mxu0 }
 0x140   :  { %v2493_v1 = vadd.f32 %v543_v61, %v3036_v52  ;;  %v614_v3 = vpop.f32.mrb[1].mxu1  ;;  %v2508_v13 = vadd.f32 %v612_v60, %v3040_v7 }
 0x141   :  { %v1924_v4 = vmul.f32 -1.442695, %v2492_v58  ;;  %v2509_v20 = vadd.f32 %v614_v3, %v3043_v16 }
 0x142   :  { %v1925_v9 = vmul.f32 -1.442695, %v2493_v1  ;;  %v1926_v17 = vmul.f32 -1.442695, %v2508_v13 }
 0x143   :  { %2565 = vpow2.f32 %v1924_v4 }
 0x144   :  { %2567 = vpow2.f32 %v1925_v9 }
 0x145   :  { %2569 = vpow2.f32 %v1926_v17 }
 0x146   :  { %2571 = vtanh.f32 %v2509_v20 }
 0x14d   :  { %v2566_v22 = vpop.eup %2565 }
 0x14e   :  { %v630_v23 = vadd.f32 1.0, %v2566_v22  ;;  %v2568_v26 = vpop.eup %2567 }
 0x14f   :  { %v631_v27 = vadd.f32 1.0, %v2568_v26  ;;  %v2570_v30 = vpop.eup %2569 }
 0x150   :  { %2573 = vrcp.f32 %v630_v23  ;;  %v2572_v32 = vpop.eup %2571  ;;  %v632_v43 = vadd.f32 1.0, %v2570_v30 }
 0x151   :  { %2575 = vrcp.f32 %v631_v27 }
 0x152   :  { %2577 = vrcp.f32 %v632_v43 }
 0x15a   :  { %v2574_v35 = vpop.eup %2573 }
 0x15b   :  { %v641_v36 = vmul.f32 %v2574_v35, %v2572_v32  ;;  %v2576_v39 = vpop.eup %2575 }
 0x15c   :  { %v640_v45 = vmul.f32 0.0, %v2576_v39  ;;  %v2578_v48 = vpop.eup %2577 }
 0x15e   :  { %v3046_v46 = vadd.f32 %v641_v36, %v640_v45 }
 0x160   :  { %2579 = vtanh.f32 %v3046_v46 }
 0x16a   :  { %v2580_v49 = vpop.eup %2579 }
 0x16b   :  { %v644_v54 = vmul.f32 %v2580_v49, %v2578_v48 }
 0x16d   :  { %717 = vmatmul.mubr.f32.vlgmr.msra.gmra.mrb[2].mxu0 %v644_v54  ;;  %788 = vmatmul.mubr.f32.vlgmr.msra.gmra.mrb[2].mxu1 %v644_v54 }
 0x16e   :  { %2111 = vmatpush1.bf16.msra.mxu0 %v2869_v62  ;;  %2143 = vmatpush1.bf16.msra.mxu1 %v2872_v2 }
 0x16f   :  { %2113 = vmatprep.subr.bf16.mxu0 %v2875_v5  ;;  %2145 = vmatprep.subr.bf16.mxu1 %v2878_v8 }
 0x170   :  { %893 = vmatprep.mubr.f32.mxu0 %v2794_v0  ;;  %964 = vmatprep.mubr.f32.mxu1 %v2794_v0 }
 0x172   :  { %2115 = vmatpush1.bf16.msra.mxu0 %v2882_v12  ;;  %2147 = vmatpush1.bf16.msra.mxu1 %v2886_v15 }
 0x173   :  { %2117 = vmatprep.subr.bf16.mxu0 %v2890_v18  ;;  %2149 = vmatprep.subr.bf16.mxu1 %v2894_v21 }
 0x176   :  { %2119 = vmatpush1.bf16.msra.mxu0 %v2898_v25  ;;  %2151 = vmatpush1.bf16.msra.mxu1 %v2902_v28 }
 0x177   :  { %2121 = vmatprep.subr.bf16.mxu0 %v2906_v31  ;;  %2153 = vmatprep.subr.bf16.mxu1 %v2910_v34 }
 0x17a   :  { %2123 = vmatpush1.bf16.msra.mxu0 %v2914_v38  ;;  %2155 = vmatpush1.bf16.msra.mxu1 %v2918_v41 }
 0x17b   :  { %2125 = vmatprep.subr.bf16.mxu0 %v2922_v44  ;;  %2157 = vmatprep.subr.bf16.mxu1 %v2926_v47 }
 0x17e   :  { %2127 = vmatpush1.bf16.msra.mxu0 %v2930_v51  ;;  %2159 = vmatpush1.bf16.msra.mxu1 %v2934_v55 }
 0x17f   :  { %2129 = vmatprep.subr.bf16.mxu0 %v2938_v59  ;;  %2161 = vmatprep.subr.bf16.mxu1 %v2942_v63 }
 0x182   :  { %2131 = vmatpush1.bf16.msra.mxu0 %v2946_v6  ;;  %2163 = vmatpush1.bf16.msra.mxu1 %v2950_v10 }
 0x183   :  { %2133 = vmatprep.subr.bf16.mxu0 %v2954_v14  ;;  %2165 = vmatprep.subr.bf16.mxu1 %v2958_v19 }
 0x186   :  { %2135 = vmatpush1.bf16.msra.mxu0 %v2962_v24  ;;  %2167 = vmatpush1.bf16.msra.mxu1 %v2966_v29 }
 0x187   :  { %2137 = vmatprep.subr.bf16.mxu0 %v2970_v33  ;;  %2169 = vmatprep.subr.bf16.mxu1 %v2974_v37 }
 0x18a   :  { %2139 = vmatpush1.bf16.msra.mxu0 %v2978_v40  ;;  %2171 = vmatpush1.bf16.msra.mxu1 %v2982_v42 }
 0x18b   :  { %2173 = vmatprep.subr.bf16.mxu0 %v2865_v53  ;;  %2205 = vmatprep.subr.bf16.mxu1 %v2867_v56 }
 0x240   :  { %v718_v57 = vpop.f32.mrb[2].mxu0  ;;  %v789_v58 = vpop.f32.mrb[2].mxu1 }
 0x241   :  { %v2494_v60 = vadd.f32 %v718_v57, %v3034_v50  ;;  %v720_v61 = vpop.f32.mrb[3].mxu0  ;;  %v791_v1 = vpop.f32.mrb[3].mxu1  ;;  %v2510_v11 = vadd.f32 %v789_v58, %v3040_v7 }
 0x242   :  { %v2495_v3 = vadd.f32 %v720_v61, %v3036_v52  ;;  %v2511_v13 = vadd.f32 %v791_v1, %v3043_v16 }
 0x243   :  { %v1927_v4 = vmul.f32 -1.442695, %v2494_v60  ;;  %v1929_v17 = vmul.f32 -1.442695, %v2510_v11 }
 0x244   :  { %v1928_v9 = vmul.f32 -1.442695, %v2495_v3 }
 0x245   :  { %2581 = vpow2.f32 %v1927_v4 }
 0x246   :  { %2583 = vpow2.f32 %v1928_v9 }
 0x247   :  { %2585 = vtanh.f32 %v2511_v13 }
 0x248   :  { %2587 = vpow2.f32 %v1929_v17 }
 0x24f   :  { %v2582_v20 = vpop.eup %2581 }
 0x250   :  { %v807_v22 = vadd.f32 1.0, %v2582_v20  ;;  %v2584_v23 = vpop.eup %2583 }
 0x251   :  { %v808_v26 = vadd.f32 1.0, %v2584_v23  ;;  %v2586_v27 = vpop.eup %2585 }
 0x252   :  { %2589 = vrcp.f32 %v807_v22  ;;  %v2588_v30 = vpop.eup %2587 }
 0x253   :  { %2591 = vrcp.f32 %v808_v26  ;;  %v809_v39 = vadd.f32 1.0, %v2588_v30 }
 0x255   :  { %2593 = vrcp.f32 %v809_v39 }
 0x25c   :  { %v2590_v32 = vpop.eup %2589 }
 0x25d   :  { %v818_v35 = vmul.f32 %v2590_v32, %v2586_v27  ;;  %v2592_v36 = vpop.eup %2591 }
 0x25e   :  { %v817_v43 = vmul.f32 %v2592_v36, %v3046_v46 }
 0x25f   :  { %v2594_v48 = vpop.eup %2593 }
 0x260   :  { %v3088_v45 = vadd.f32 %v818_v35, %v817_v43 }
 0x262   :  { %2595 = vtanh.f32 %v3088_v45 }
 0x26c   :  { %v2596_v49 = vpop.eup %2595 }
 0x26d   :  { %v821_v54 = vmul.f32 %v2596_v49, %v2594_v48 }
 0x26f   :  { %894 = vmatmul.mubr.f32.vlgmr.msra.gmra.mrb[4].mxu0 %v821_v54  ;;  %965 = vmatmul.mubr.f32.vlgmr.msra.gmra.mrb[4].mxu1 %v821_v54 }
 0x270   :  { %2175 = vmatpush1.bf16.msra.mxu0 %v2869_v62  ;;  %2207 = vmatpush1.bf16.msra.mxu1 %v2872_v2 }
 0x271   :  { %2177 = vmatprep.subr.bf16.mxu0 %v2875_v5  ;;  %2209 = vmatprep.subr.bf16.mxu1 %v2878_v8 }
 0x272   :  { %1070 = vmatprep.mubr.f32.mxu0 %v2794_v0  ;;  %1141 = vmatprep.mubr.f32.mxu1 %v2794_v0 }
 0x274   :  { %2179 = vmatpush1.bf16.msra.mxu0 %v2882_v12  ;;  %2211 = vmatpush1.bf16.msra.mxu1 %v2886_v15 }
 0x275   :  { %2181 = vmatprep.subr.bf16.mxu0 %v2890_v18  ;;  %2213 = vmatprep.subr.bf16.mxu1 %v2894_v21 }
 0x278   :  { %2183 = vmatpush1.bf16.msra.mxu0 %v2898_v25  ;;  %2215 = vmatpush1.bf16.msra.mxu1 %v2902_v28 }
 0x279   :  { %2185 = vmatprep.subr.bf16.mxu0 %v2906_v31  ;;  %2217 = vmatprep.subr.bf16.mxu1 %v2910_v34 }
 0x27c   :  { %2187 = vmatpush1.bf16.msra.mxu0 %v2914_v38  ;;  %2219 = vmatpush1.bf16.msra.mxu1 %v2918_v41 }
 0x27d   :  { %2189 = vmatprep.subr.bf16.mxu0 %v2922_v44  ;;  %2221 = vmatprep.subr.bf16.mxu1 %v2926_v47 }
 0x280   :  { %2191 = vmatpush1.bf16.msra.mxu0 %v2930_v51  ;;  %2223 = vmatpush1.bf16.msra.mxu1 %v2934_v55 }
 0x281   :  { %2193 = vmatprep.subr.bf16.mxu0 %v2938_v59  ;;  %2225 = vmatprep.subr.bf16.mxu1 %v2942_v63 }
 0x284   :  { %2195 = vmatpush1.bf16.msra.mxu0 %v2946_v6  ;;  %2227 = vmatpush1.bf16.msra.mxu1 %v2950_v10 }
 0x285   :  { %2197 = vmatprep.subr.bf16.mxu0 %v2954_v14  ;;  %2229 = vmatprep.subr.bf16.mxu1 %v2958_v19 }
 0x288   :  { %2199 = vmatpush1.bf16.msra.mxu0 %v2962_v24  ;;  %2231 = vmatpush1.bf16.msra.mxu1 %v2966_v29 }
 0x289   :  { %2201 = vmatprep.subr.bf16.mxu0 %v2970_v33  ;;  %2233 = vmatprep.subr.bf16.mxu1 %v2974_v37 }
 0x28c   :  { %2203 = vmatpush1.bf16.msra.mxu0 %v2978_v40  ;;  %2235 = vmatpush1.bf16.msra.mxu1 %v2982_v42 }
 0x28d   :  { %2237 = vmatprep.subr.bf16.mxu0 %v2865_v53  ;;  %2269 = vmatprep.subr.bf16.mxu1 %v2867_v56 }
 0x342   :  { %v895_v46 = vpop.f32.mrb[4].mxu0  ;;  %v966_v57 = vpop.f32.mrb[4].mxu1 }
 0x343   :  { %v2496_v58 = vadd.f32 %v895_v46, %v3034_v50  ;;  %v897_v60 = vpop.f32.mrb[5].mxu0  ;;  %v968_v61 = vpop.f32.mrb[5].mxu1  ;;  %v2512_v9 = vadd.f32 %v966_v57, %v3040_v7 }
 0x344   :  { %v2497_v1 = vadd.f32 %v897_v60, %v3036_v52  ;;  %v2513_v11 = vadd.f32 %v968_v61, %v3043_v16 }
 0x345   :  { %v1930_v3 = vmul.f32 -1.442695, %v2496_v58  ;;  %v1932_v13 = vmul.f32 -1.442695, %v2512_v9 }
 0x346   :  { %v1931_v4 = vmul.f32 -1.442695, %v2497_v1 }
 0x347   :  { %2597 = vpow2.f32 %v1930_v3 }
 0x348   :  { %2599 = vpow2.f32 %v1931_v4 }
 0x349   :  { %2601 = vtanh.f32 %v2513_v11 }
 0x34a   :  { %2603 = vpow2.f32 %v1932_v13 }
 0x351   :  { %v2598_v17 = vpop.eup %2597 }
 0x352   :  { %v984_v20 = vadd.f32 1.0, %v2598_v17  ;;  %v2600_v22 = vpop.eup %2599 }
 0x353   :  { %v985_v23 = vadd.f32 1.0, %v2600_v22  ;;  %v2602_v26 = vpop.eup %2601 }
 0x354   :  { %2605 = vrcp.f32 %v984_v20  ;;  %v2604_v27 = vpop.eup %2603 }
 0x355   :  { %2607 = vrcp.f32 %v985_v23  ;;  %v986_v36 = vadd.f32 1.0, %v2604_v27 }
 0x357   :  { %2609 = vrcp.f32 %v986_v36 }
 0x35e   :  { %v2606_v30 = vpop.eup %2605 }
 0x35f   :  { %v995_v32 = vmul.f32 %v2606_v30, %v2602_v26  ;;  %v2608_v35 = vpop.eup %2607 }
 0x360   :  { %v994_v39 = vmul.f32 %v2608_v35, %v3088_v45 }
 0x361   :  { %v2610_v48 = vpop.eup %2609 }
 0x362   :  { %v3130_v43 = vadd.f32 %v995_v32, %v994_v39 }
 0x364   :  { %2611 = vtanh.f32 %v3130_v43 }
 0x36e   :  { %v2612_v49 = vpop.eup %2611 }
 0x36f   :  { %v998_v54 = vmul.f32 %v2612_v49, %v2610_v48 }
 0x371   :  { %1071 = vmatmul.mubr.f32.vlgmr.msra.gmra.mrb[6].mxu0 %v998_v54  ;;  %1142 = vmatmul.mubr.f32.vlgmr.msra.gmra.mrb[6].mxu1 %v998_v54 }
 0x372   :  { %2239 = vmatpush1.bf16.msra.mxu0 %v2869_v62  ;;  %2271 = vmatpush1.bf16.msra.mxu1 %v2872_v2 }
 0x373   :  { %2241 = vmatprep.subr.bf16.mxu0 %v2875_v5  ;;  %2273 = vmatprep.subr.bf16.mxu1 %v2878_v8 }
 0x374   :  { %1247 = vmatprep.mubr.f32.mxu0 %v2794_v0  ;;  %1318 = vmatprep.mubr.f32.mxu1 %v2794_v0 }
 0x376   :  { %2243 = vmatpush1.bf16.msra.mxu0 %v2882_v12  ;;  %2275 = vmatpush1.bf16.msra.mxu1 %v2886_v15 }
 0x377   :  { %2245 = vmatprep.subr.bf16.mxu0 %v2890_v18  ;;  %2277 = vmatprep.subr.bf16.mxu1 %v2894_v21 }
 0x37a   :  { %2247 = vmatpush1.bf16.msra.mxu0 %v2898_v25  ;;  %2279 = vmatpush1.bf16.msra.mxu1 %v2902_v28 }
 0x37b   :  { %2249 = vmatprep.subr.bf16.mxu0 %v2906_v31  ;;  %2281 = vmatprep.subr.bf16.mxu1 %v2910_v34 }
 0x37e   :  { %2251 = vmatpush1.bf16.msra.mxu0 %v2914_v38  ;;  %2283 = vmatpush1.bf16.msra.mxu1 %v2918_v41 }
 0x37f   :  { %2253 = vmatprep.subr.bf16.mxu0 %v2922_v44  ;;  %2285 = vmatprep.subr.bf16.mxu1 %v2926_v47 }
 0x382   :  { %2255 = vmatpush1.bf16.msra.mxu0 %v2930_v51  ;;  %2287 = vmatpush1.bf16.msra.mxu1 %v2934_v55 }
 0x383   :  { %2257 = vmatprep.subr.bf16.mxu0 %v2938_v59  ;;  %2289 = vmatprep.subr.bf16.mxu1 %v2942_v63 }
 0x386   :  { %2259 = vmatpush1.bf16.msra.mxu0 %v2946_v6  ;;  %2291 = vmatpush1.bf16.msra.mxu1 %v2950_v10 }
 0x387   :  { %2261 = vmatprep.subr.bf16.mxu0 %v2954_v14  ;;  %2293 = vmatprep.subr.bf16.mxu1 %v2958_v19 }
 0x38a   :  { %2263 = vmatpush1.bf16.msra.mxu0 %v2962_v24  ;;  %2295 = vmatpush1.bf16.msra.mxu1 %v2966_v29 }
 0x38b   :  { %2265 = vmatprep.subr.bf16.mxu0 %v2970_v33  ;;  %2297 = vmatprep.subr.bf16.mxu1 %v2974_v37 }
 0x38e   :  { %2267 = vmatpush1.bf16.msra.mxu0 %v2978_v40  ;;  %2299 = vmatpush1.bf16.msra.mxu1 %v2982_v42 }
 0x38f   :  { %2301 = vmatprep.subr.bf16.mxu0 %v2865_v53  ;;  %2333 = vmatprep.subr.bf16.mxu1 %v2867_v56 }
 0x444   :  { %v1072_v45 = vpop.f32.mrb[6].mxu0  ;;  %v1143_v46 = vpop.f32.mrb[6].mxu1 }
 0x445   :  { %v2498_v57 = vadd.f32 %v1072_v45, %v3034_v50  ;;  %v1074_v58 = vpop.f32.mrb[7].mxu0  ;;  %v1145_v60 = vpop.f32.mrb[7].mxu1  ;;  %v2514_v4 = vadd.f32 %v1143_v46, %v3040_v7 }
 0x446   :  { %v2499_v61 = vadd.f32 %v1074_v58, %v3036_v52  ;;  %v2515_v9 = vadd.f32 %v1145_v60, %v3043_v16 }
 0x447   :  { %v1933_v1 = vmul.f32 -1.442695, %v2498_v57  ;;  %v1935_v11 = vmul.f32 -1.442695, %v2514_v4 }
 0x448   :  { %v1934_v3 = vmul.f32 -1.442695, %v2499_v61 }
 0x449   :  { %2613 = vpow2.f32 %v1933_v1 }
 0x44a   :  { %2615 = vpow2.f32 %v1934_v3 }
 0x44b   :  { %2617 = vtanh.f32 %v2515_v9 }
 0x44c   :  { %2619 = vpow2.f32 %v1935_v11 }
 0x453   :  { %v2614_v13 = vpop.eup %2613 }
 0x454   :  { %v1161_v17 = vadd.f32 1.0, %v2614_v13  ;;  %v2616_v20 = vpop.eup %2615 }
 0x455   :  { %v1162_v22 = vadd.f32 1.0, %v2616_v20  ;;  %v2618_v23 = vpop.eup %2617 }
 0x456   :  { %2621 = vrcp.f32 %v1161_v17  ;;  %v2620_v26 = vpop.eup %2619 }
 0x457   :  { %2623 = vrcp.f32 %v1162_v22  ;;  %v1163_v35 = vadd.f32 1.0, %v2620_v26 }
 0x459   :  { %2625 = vrcp.f32 %v1163_v35 }
 0x460   :  { %v2622_v27 = vpop.eup %2621 }
 0x461   :  { %v1172_v30 = vmul.f32 %v2622_v27, %v2618_v23  ;;  %v2624_v32 = vpop.eup %2623 }
 0x462   :  { %v1171_v36 = vmul.f32 %v2624_v32, %v3130_v43 }
 0x463   :  { %v2626_v48 = vpop.eup %2625 }
 0x464   :  { %v3172_v39 = vadd.f32 %v1172_v30, %v1171_v36 }
 0x466   :  { %2627 = vtanh.f32 %v3172_v39 }
 0x470   :  { %v2628_v49 = vpop.eup %2627 }
 0x471   :  { %v1175_v54 = vmul.f32 %v2628_v49, %v2626_v48 }
 0x473   :  { %1248 = vmatmul.mubr.f32.vlgmr.msra.gmra.mrb[8].mxu0 %v1175_v54  ;;  %1319 = vmatmul.mubr.f32.vlgmr.msra.gmra.mrb[8].mxu1 %v1175_v54 }
 0x474   :  { %2303 = vmatpush1.bf16.msra.mxu0 %v2869_v62  ;;  %2335 = vmatpush1.bf16.msra.mxu1 %v2872_v2 }
 0x475   :  { %2305 = vmatprep.subr.bf16.mxu0 %v2875_v5  ;;  %2337 = vmatprep.subr.bf16.mxu1 %v2878_v8 }
 0x476   :  { %1424 = vmatprep.mubr.f32.mxu0 %v2794_v0  ;;  %1495 = vmatprep.mubr.f32.mxu1 %v2794_v0 }
 0x478   :  { %2307 = vmatpush1.bf16.msra.mxu0 %v2882_v12  ;;  %2339 = vmatpush1.bf16.msra.mxu1 %v2886_v15 }
 0x479   :  { %2309 = vmatprep.subr.bf16.mxu0 %v2890_v18  ;;  %2341 = vmatprep.subr.bf16.mxu1 %v2894_v21 }
 0x47c   :  { %2311 = vmatpush1.bf16.msra.mxu0 %v2898_v25  ;;  %2343 = vmatpush1.bf16.msra.mxu1 %v2902_v28 }
 0x47d   :  { %2313 = vmatprep.subr.bf16.mxu0 %v2906_v31  ;;  %2345 = vmatprep.subr.bf16.mxu1 %v2910_v34 }
 0x480   :  { %2315 = vmatpush1.bf16.msra.mxu0 %v2914_v38  ;;  %2347 = vmatpush1.bf16.msra.mxu1 %v2918_v41 }
 0x481   :  { %2317 = vmatprep.subr.bf16.mxu0 %v2922_v44  ;;  %2349 = vmatprep.subr.bf16.mxu1 %v2926_v47 }
 0x484   :  { %2319 = vmatpush1.bf16.msra.mxu0 %v2930_v51  ;;  %2351 = vmatpush1.bf16.msra.mxu1 %v2934_v55 }
 0x485   :  { %2321 = vmatprep.subr.bf16.mxu0 %v2938_v59  ;;  %2353 = vmatprep.subr.bf16.mxu1 %v2942_v63 }
 0x488   :  { %2323 = vmatpush1.bf16.msra.mxu0 %v2946_v6  ;;  %2355 = vmatpush1.bf16.msra.mxu1 %v2950_v10 }
 0x489   :  { %2325 = vmatprep.subr.bf16.mxu0 %v2954_v14  ;;  %2357 = vmatprep.subr.bf16.mxu1 %v2958_v19 }
 0x48c   :  { %2327 = vmatpush1.bf16.msra.mxu0 %v2962_v24  ;;  %2359 = vmatpush1.bf16.msra.mxu1 %v2966_v29 }
 0x48d   :  { %2329 = vmatprep.subr.bf16.mxu0 %v2970_v33  ;;  %2361 = vmatprep.subr.bf16.mxu1 %v2974_v37 }
 0x490   :  { %2331 = vmatpush1.bf16.msra.mxu0 %v2978_v40  ;;  %2363 = vmatpush1.bf16.msra.mxu1 %v2982_v42 }
 0x491   :  { %2365 = vmatprep.subr.bf16.mxu0 %v2865_v53  ;;  %2397 = vmatprep.subr.bf16.mxu1 %v2867_v56 }
 0x546   :  { %v1249_v43 = vpop.f32.mrb[8].mxu0  ;;  %v1320_v45 = vpop.f32.mrb[8].mxu1 }
 0x547   :  { %v2500_v46 = vadd.f32 %v1249_v43, %v3034_v50  ;;  %v1251_v57 = vpop.f32.mrb[9].mxu0  ;;  %v1322_v58 = vpop.f32.mrb[9].mxu1  ;;  %v2516_v3 = vadd.f32 %v1320_v45, %v3040_v7 }
 0x548   :  { %v2501_v60 = vadd.f32 %v1251_v57, %v3036_v52  ;;  %v2517_v4 = vadd.f32 %v1322_v58, %v3043_v16 }
 0x549   :  { %v1936_v61 = vmul.f32 -1.442695, %v2500_v46  ;;  %v1938_v9 = vmul.f32 -1.442695, %v2516_v3 }
 0x54a   :  { %v1937_v1 = vmul.f32 -1.442695, %v2501_v60 }
 0x54b   :  { %2629 = vpow2.f32 %v1936_v61 }
 0x54c   :  { %2631 = vpow2.f32 %v1937_v1 }
 0x54d   :  { %2633 = vtanh.f32 %v2517_v4 }
 0x54e   :  { %2635 = vpow2.f32 %v1938_v9 }
 0x555   :  { %v2630_v11 = vpop.eup %2629 }
 0x556   :  { %v1338_v13 = vadd.f32 1.0, %v2630_v11  ;;  %v2632_v17 = vpop.eup %2631 }
 0x557   :  { %v1339_v20 = vadd.f32 1.0, %v2632_v17  ;;  %v2634_v22 = vpop.eup %2633 }
 0x558   :  { %2637 = vrcp.f32 %v1338_v13  ;;  %v2636_v23 = vpop.eup %2635 }
 0x559   :  { %2639 = vrcp.f32 %v1339_v20  ;;  %v1340_v32 = vadd.f32 1.0, %v2636_v23 }
 0x55b   :  { %2641 = vrcp.f32 %v1340_v32 }
 0x562   :  { %v2638_v26 = vpop.eup %2637 }
 0x563   :  { %v1349_v27 = vmul.f32 %v2638_v26, %v2634_v22  ;;  %v2640_v30 = vpop.eup %2639 }
 0x564   :  { %v1348_v35 = vmul.f32 %v2640_v30, %v3172_v39 }
 0x565   :  { %v2642_v48 = vpop.eup %2641 }
 0x566   :  { %v3214_v36 = vadd.f32 %v1349_v27, %v1348_v35 }
 0x568   :  { %2643 = vtanh.f32 %v3214_v36 }
 0x572   :  { %v2644_v49 = vpop.eup %2643 }
 0x573   :  { %v1352_v54 = vmul.f32 %v2644_v49, %v2642_v48 }
 0x575   :  { %1425 = vmatmul.mubr.f32.vlgmr.msra.gmra.mrb[10].mxu0 %v1352_v54  ;;  %1496 = vmatmul.mubr.f32.vlgmr.msra.gmra.mrb[10].mxu1 %v1352_v54 }
 0x576   :  { %2367 = vmatpush1.bf16.msra.mxu0 %v2869_v62  ;;  %2399 = vmatpush1.bf16.msra.mxu1 %v2872_v2 }
 0x577   :  { %2369 = vmatprep.subr.bf16.mxu0 %v2875_v5  ;;  %2401 = vmatprep.subr.bf16.mxu1 %v2878_v8 }
 0x578   :  { %1601 = vmatprep.mubr.f32.mxu0 %v2794_v0  ;;  %1672 = vmatprep.mubr.f32.mxu1 %v2794_v0 }
 0x57a   :  { %2371 = vmatpush1.bf16.msra.mxu0 %v2882_v12  ;;  %2403 = vmatpush1.bf16.msra.mxu1 %v2886_v15 }
 0x57b   :  { %2373 = vmatprep.subr.bf16.mxu0 %v2890_v18  ;;  %2405 = vmatprep.subr.bf16.mxu1 %v2894_v21 }
 0x57e   :  { %2375 = vmatpush1.bf16.msra.mxu0 %v2898_v25  ;;  %2407 = vmatpush1.bf16.msra.mxu1 %v2902_v28 }
 0x57f   :  { %2377 = vmatprep.subr.bf16.mxu0 %v2906_v31  ;;  %2409 = vmatprep.subr.bf16.mxu1 %v2910_v34 }
 0x582   :  { %2379 = vmatpush1.bf16.msra.mxu0 %v2914_v38  ;;  %2411 = vmatpush1.bf16.msra.mxu1 %v2918_v41 }
 0x583   :  { %2381 = vmatprep.subr.bf16.mxu0 %v2922_v44  ;;  %2413 = vmatprep.subr.bf16.mxu1 %v2926_v47 }
 0x586   :  { %2383 = vmatpush1.bf16.msra.mxu0 %v2930_v51  ;;  %2415 = vmatpush1.bf16.msra.mxu1 %v2934_v55 }
 0x587   :  { %2385 = vmatprep.subr.bf16.mxu0 %v2938_v59  ;;  %2417 = vmatprep.subr.bf16.mxu1 %v2942_v63 }
 0x58a   :  { %2387 = vmatpush1.bf16.msra.mxu0 %v2946_v6  ;;  %2419 = vmatpush1.bf16.msra.mxu1 %v2950_v10 }
 0x58b   :  { %2389 = vmatprep.subr.bf16.mxu0 %v2954_v14  ;;  %2421 = vmatprep.subr.bf16.mxu1 %v2958_v19 }
 0x58e   :  { %2391 = vmatpush1.bf16.msra.mxu0 %v2962_v24  ;;  %2423 = vmatpush1.bf16.msra.mxu1 %v2966_v29 }
 0x58f   :  { %2393 = vmatprep.subr.bf16.mxu0 %v2970_v33  ;;  %2425 = vmatprep.subr.bf16.mxu1 %v2974_v37 }
 0x592   :  { %2395 = vmatpush1.bf16.msra.mxu0 %v2978_v40  ;;  %2427 = vmatpush1.bf16.msra.mxu1 %v2982_v42 }
 0x593   :  { %2429 = vmatprep.subr.bf16.mxu0 %v2865_v53  ;;  %2461 = vmatprep.subr.bf16.mxu1 %v2867_v56 }
 0x648   :  { %v1426_v39 = vpop.f32.mrb[10].mxu0  ;;  %v1497_v43 = vpop.f32.mrb[10].mxu1 }
 0x649   :  { %v2502_v45 = vadd.f32 %v1426_v39, %v3034_v50  ;;  %v1428_v46 = vpop.f32.mrb[11].mxu0  ;;  %v1499_v57 = vpop.f32.mrb[11].mxu1  ;;  %v2518_v1 = vadd.f32 %v1497_v43, %v3040_v7 }
 0x64a   :  { %v2503_v58 = vadd.f32 %v1428_v46, %v3036_v52  ;;  %v2519_v3 = vadd.f32 %v1499_v57, %v3043_v16 }
 0x64b   :  { %v1939_v60 = vmul.f32 -1.442695, %v2502_v45  ;;  %v1941_v4 = vmul.f32 -1.442695, %v2518_v1 }
 0x64c   :  { %v1940_v61 = vmul.f32 -1.442695, %v2503_v58 }
 0x64d   :  { %2645 = vpow2.f32 %v1939_v60 }
 0x64e   :  { %2647 = vpow2.f32 %v1940_v61 }
 0x64f   :  { %2649 = vtanh.f32 %v2519_v3 }
 0x650   :  { %2651 = vpow2.f32 %v1941_v4 }
 0x657   :  { %v2646_v53 = vpop.eup %2645 }
 0x658   :  { %v1515_v9 = vadd.f32 1.0, %v2646_v53  ;;  %v2648_v56 = vpop.eup %2647 }
 0x659   :  { %v1516_v11 = vadd.f32 1.0, %v2648_v56  ;;  %v2650_v13 = vpop.eup %2649 }
 0x65a   :  { %2653 = vrcp.f32 %v1515_v9  ;;  %v2652_v17 = vpop.eup %2651 }
 0x65b   :  { %2655 = vrcp.f32 %v1516_v11  ;;  %v1517_v26 = vadd.f32 1.0, %v2652_v17 }
 0x65d   :  { %2657 = vrcp.f32 %v1517_v26 }
 0x664   :  { %v2654_v20 = vpop.eup %2653 }
 0x665   :  { %v1526_v22 = vmul.f32 %v2654_v20, %v2650_v13  ;;  %v2656_v23 = vpop.eup %2655 }
 0x666   :  { %v1525_v27 = vmul.f32 %v2656_v23, %v3214_v36 }
 0x667   :  { %v2658_v32 = vpop.eup %2657 }
 0x668   :  { %v3256_v30 = vadd.f32 %v1526_v22, %v1525_v27 }
 0x66a   :  { %2659 = vtanh.f32 %v3256_v30 }
 0x674   :  { %v2660_v35 = vpop.eup %2659 }
 0x675   :  { %v1529_v48 = vmul.f32 %v2660_v35, %v2658_v32 }
 0x677   :  { %1602 = vmatmul.mubr.f32.vlgmr.msra.gmra.mrb[12].mxu0 %v1529_v48  ;;  %1673 = vmatmul.mubr.f32.vlgmr.msra.gmra.mrb[12].mxu1 %v1529_v48 }
 0x678   :  { %2431 = vmatpush1.bf16.msra.mxu0 %v2869_v62  ;;  %2463 = vmatpush1.bf16.msra.mxu1 %v2872_v2 }
 0x679   :  { %2433 = vmatprep.subr.bf16.mxu0 %v2875_v5  ;;  %2465 = vmatprep.subr.bf16.mxu1 %v2878_v8 }
 0x67a   :  { %1778 = vmatprep.mubr.f32.mxu0 %v2794_v0  ;;  %1849 = vmatprep.mubr.f32.mxu1 %v2794_v0 }
 0x67c   :  { %2435 = vmatpush1.bf16.msra.mxu0 %v2882_v12  ;;  %2467 = vmatpush1.bf16.msra.mxu1 %v2886_v15 }
 0x67d   :  { %2437 = vmatprep.subr.bf16.mxu0 %v2890_v18  ;;  %2469 = vmatprep.subr.bf16.mxu1 %v2894_v21 }
 0x680   :  { %2439 = vmatpush1.bf16.msra.mxu0 %v2898_v25  ;;  %2471 = vmatpush1.bf16.msra.mxu1 %v2902_v28 }
 0x681   :  { %2441 = vmatprep.subr.bf16.mxu0 %v2906_v31  ;;  %2473 = vmatprep.subr.bf16.mxu1 %v2910_v34 }
 0x684   :  { %2443 = vmatpush1.bf16.msra.mxu0 %v2914_v38  ;;  %2475 = vmatpush1.bf16.msra.mxu1 %v2918_v41 }
 0x685   :  { %2445 = vmatprep.subr.bf16.mxu0 %v2922_v44  ;;  %2477 = vmatprep.subr.bf16.mxu1 %v2926_v47 }
 0x688   :  { %2447 = vmatpush1.bf16.msra.mxu0 %v2930_v51  ;;  %2479 = vmatpush1.bf16.msra.mxu1 %v2934_v55 }
 0x689   :  { %2449 = vmatprep.subr.bf16.mxu0 %v2938_v59  ;;  %2481 = vmatprep.subr.bf16.mxu1 %v2942_v63 }
 0x68c   :  { %2451 = vmatpush1.bf16.msra.mxu0 %v2946_v6  ;;  %2483 = vmatpush1.bf16.msra.mxu1 %v2950_v10 }
 0x68d   :  { %2453 = vmatprep.subr.bf16.mxu0 %v2954_v14  ;;  %2485 = vmatprep.subr.bf16.mxu1 %v2958_v19 }
 0x690   :  { %2455 = vmatpush1.bf16.msra.mxu0 %v2962_v24  ;;  %2487 = vmatpush1.bf16.msra.mxu1 %v2966_v29 }
 0x691   :  { %2457 = vmatprep.subr.bf16.mxu0 %v2970_v33  ;;  %2489 = vmatprep.subr.bf16.mxu1 %v2974_v37 }
 0x694   :  { %2459 = vmatpush1.bf16.msra.mxu0 %v2978_v40  ;;  %2491 = vmatpush1.bf16.msra.mxu1 %v2982_v42 }
 0x74a   :  { %v1603_v0 = vpop.f32.mrb[12].mxu0  ;;  %v1674_v62 = vpop.f32.mrb[12].mxu1 }
 0x74b   :  { %v2504_v2 = vadd.f32 %v1603_v0, %v3034_v50  ;;  %v1605_v5 = vpop.f32.mrb[13].mxu0  ;;  %v1676_v8 = vpop.f32.mrb[13].mxu1  ;;  %v2520_v21 = vadd.f32 %v1674_v62, %v3040_v7 }
 0x74c   :  { %v2505_v12 = vadd.f32 %v1605_v5, %v3036_v52  ;;  %v2521_v25 = vadd.f32 %v1676_v8, %v3043_v16 }
 0x74d   :  { %v1942_v15 = vmul.f32 -1.442695, %v2504_v2  ;;  %v1944_v28 = vmul.f32 -1.442695, %v2520_v21 }
 0x74e   :  { %v1943_v18 = vmul.f32 -1.442695, %v2505_v12 }
 0x74f   :  { %2661 = vpow2.f32 %v1942_v15 }
 0x750   :  { %2663 = vpow2.f32 %v1943_v18 }
 0x751   :  { %2665 = vtanh.f32 %v2521_v25 }
 0x752   :  { %2667 = vpow2.f32 %v1944_v28 }
 0x759   :  { %v2662_v31 = vpop.eup %2661 }
 0x75a   :  { %v1692_v34 = vadd.f32 1.0, %v2662_v31  ;;  %v2664_v38 = vpop.eup %2663 }
 0x75b   :  { %v1693_v41 = vadd.f32 1.0, %v2664_v38  ;;  %v2666_v44 = vpop.eup %2665 }
 0x75c   :  { %2669 = vrcp.f32 %v1692_v34  ;;  %v2668_v47 = vpop.eup %2667 }
 0x75d   :  { %2671 = vrcp.f32 %v1693_v41  ;;  %v1694_v63 = vadd.f32 1.0, %v2668_v47 }
 0x75f   :  { %2673 = vrcp.f32 %v1694_v63 }
 0x766   :  { %v2670_v51 = vpop.eup %2669 }
 0x767   :  { %v1703_v55 = vmul.f32 %v2670_v51, %v2666_v44  ;;  %v2672_v59 = vpop.eup %2671 }
 0x768   :  { %v1702_v6 = vmul.f32 %v2672_v59, %v3256_v30 }
 0x769   :  { %v2674_v14 = vpop.eup %2673 }
 0x76a   :  { %v1704_v10 = vadd.f32 %v1703_v55, %v1702_v6 }
 0x76c   :  { %2675 = vtanh.f32 %v1704_v10 }
 0x776   :  { %v2676_v19 = vpop.eup %2675 }
 0x777   :  { %v1706_v24 = vmul.f32 %v2676_v19, %v2674_v14 }
 0x779   :  { %1779 = vmatmul.mubr.f32.vlgmr.msra.gmra.mrb[14].mxu0 %v1706_v24  ;;  %1850 = vmatmul.mubr.f32.vlgmr.msra.gmra.mrb[14].mxu1 %v1706_v24 }
 0x84c   :  { %v1780_v29 = vpop.f32.mrb[14].mxu0  ;;  %v1851_v33 = vpop.f32.mrb[14].mxu1 }
 0x84d   :  { %v2506_v37 = vadd.f32 %v1780_v29, %v3034_v50  ;;  %v1782_v40 = vpop.f32.mrb[15].mxu0  ;;  %v1853_v42 = vpop.f32.mrb[15].mxu1  ;;  %v2522_v39 = vadd.f32 %v1851_v33, %v3040_v7 }
 0x84e   :  { %v2507_v36 = vadd.f32 %v1782_v40, %v3036_v52  ;;  %v2523_v43 = vadd.f32 %v1853_v42, %v3043_v16 }
 0x84f   :  { %v1945_v49 = vmul.f32 -1.442695, %v2506_v37  ;;  %v1947_v45 = vmul.f32 -1.442695, %v2522_v39 }
 0x850   :  { %v1946_v54 = vmul.f32 -1.442695, %v2507_v36 }
 0x851   :  { %2677 = vpow2.f32 %v1945_v49 }
 0x852   :  { %2679 = vpow2.f32 %v1946_v54 }
 0x853   :  { %2681 = vtanh.f32 %v2523_v43 }
 0x854   :  { %2683 = vpow2.f32 %v1947_v45 }
 0x85b   :  { %v2678_v46 = vpop.eup %2677 }
 0x85c   :  { %v1869_v57 = vadd.f32 1.0, %v2678_v46  ;;  %v2680_v58 = vpop.eup %2679 }
 0x85d   :  { %v1870_v50 = vadd.f32 1.0, %v2680_v58  ;;  %v2682_v60 = vpop.eup %2681 }
 0x85e   :  { %2685 = vrcp.f32 %v1869_v57  ;;  %v2684_v61 = vpop.eup %2683 }
 0x85f   :  { %2687 = vrcp.f32 %v1870_v50  ;;  %v1871_v4 = vadd.f32 1.0, %v2684_v61 }
 0x861   :  { %2689 = vrcp.f32 %v1871_v4 }
 0x868   :  { %v2686_v52 = vpop.eup %2685 }
 0x869   :  { %v1880_v1 = vmul.f32 %v2686_v52, %v2682_v60  ;;  %v2688_v3 = vpop.eup %2687 }
 0x86a   :  { %v1879_v53 = vmul.f32 %v2688_v3, %v1704_v10 }
 0x86b   :  { %v2690_v7 = vpop.eup %2689 }
 0x86c   :  { %v1881_v9 = vadd.f32 %v1880_v1, %v1879_v53 }
 0x86e   :  { %2691 = vtanh.f32 %v1881_v9 }
 0x878   :  { %v2692_v16 = vpop.eup %2691 }
 0x879   :  { %v1883_v56 = vmul.f32 %v2692_v16, %v2690_v7 }
 0x87b   :  { %1884 = vst [vmem:[#allocation9] sm:$0xff] %v1883_v56 }
 0x87c   :  { %2770 = shalt.err (!%p2767_p0)
}
 0x87d   :  { %s2771_s6 = scalar_lea.hbm %s3316_s4, 128 }
 0x87e   :  { %p2772_p1 = scmp.ne.s32.totalorder %s3316_s4, %s2771_s6  ;;  %p2775_p2 = scmp.lt.u32.totalorder %s2771_s6, %s3316_s4 }
 0x880   :  { %p2777_p3 = pnand %p2775_p2, %p2772_p1 }
 0x882   :  { %2780 = shalt.err (!%p2777_p3)
}
 0x883   :  { %1894 = dma.vmem_to_hbm [thread:$0]  %s1892_s26, 128, %s3316_s4, [#allocation5]  }
 0x884   :  { %2785 = dma.done.wait [#allocation5], 128  }
 0x885   :  { %2786 = vsyncadd [#allocation5], 4294967168 }
 0x886   :  { %1898 = vsyncpa [#allocation4], 1 }
 0x887   :  { %1899 = vsyncpa [#allocation7], 1 }
 0x888   :  { %1900 = vsyncpa [#allocation5], 1 }

</bundles_post_ra>
